<compile_context>
chip_gen: v7x
topology: tpu7x:2x2x1
jax: 0.10.0
libtpu: 0.0.40
codegen_flags: <defaults>
</compile_context>

<pallas_src>
import functools

import jax
import jax.numpy as jnp
from jax.experimental import pallas as pl
from jax.experimental.pallas import tpu as pltpu


# ----------------------------- config ---------------------------------------

CFG = dict(
    vocab_size=128,
    emb_dim=128,
    n_heads=4,
    n_kv_groups=2,
    head_dim=32,
    hidden_dim=256,
    n_layers=2,
    context_length=16,
    rope_base=10000.0,
    qk_norm=True,
    dtype=jnp.float32,        # activation / logits dtype
    mxu_dtype=jnp.bfloat16,   # weight storage & MXU operand dtype
)
EPS = 1e-6


# --------------------------- fused model kernel ------------------------------

def _qwen3_fused_kernel(
    x_ref, cosq_ref, s1q_ref, s2q_ref, coskv_ref, s1kv_ref, s2kv_ref,
    mq_ref, mkv_ref, vpass_ref, norm1_ref, norm2_ref, qn_ref, kn_ref,
    wqkv_ref, wo_ref, w12_ref, w3_ref, fnorm_ref, whead_ref, out_ref,
    *, L, H, Hkv, hd, T, Dff, qk_norm):
    """One batch element: all layers (norm+QKV, attention, norm+SwiGLU) plus
    final norm + LM head, entirely in VMEM."""
    G = H // Hkv
    Wq = H * hd                       # 128 query lanes
    Wk = Hkv * hd                     # 64 key lanes (V occupies the next 64)
    half = hd // 2
    scale = jnp.float32(1.0 / (hd ** 0.5))
    neg = jnp.float32(-1e30)

    x = x_ref[0].astype(jnp.float32)                         # [T, D]

    cos_q, s1_q, s2_q = cosq_ref[...], s1q_ref[...], s2q_ref[...]
    cos_kv, s1_kv, s2_kv = coskv_ref[...], s1kv_ref[...], s2kv_ref[...]

    # Causal mask shared by every layer / kv-group (G query heads stacked rows).
    qpos = jax.lax.broadcasted_iota(jnp.int32, (G * T, T), 0) % T
    kpos = jax.lax.broadcasted_iota(jnp.int32, (G * T, T), 1)
    causal = kpos > qpos

    def rms(v, scale_row):
        var = jnp.mean(v * v, axis=-1, keepdims=True)
        return v * jax.lax.rsqrt(var + EPS) * scale_row

    def rope(v, cos, s1, s2):
        # Segmented rotate-half via two full-width rolls; the per-half signs
        # and the "no-RoPE" V lanes are baked into the precomputed multipliers.
        w = v.shape[-1]
        return (v * cos
                + pltpu.roll(v, shift=w - half, axis=1) * s1
                + pltpu.roll(v, shift=half, axis=1) * s2)

    for l in range(L):
        # -------- attention sub-block: norm + QKV + attn + out-proj + residual
        h1 = rms(x, norm1_ref[l].astype(jnp.float32))
        qkv = jnp.dot(h1.astype(wqkv_ref.dtype), wqkv_ref[l],
                      preferred_element_type=jnp.float32)     # [T, Wq+2*Wk]
        q = qkv[:, :Wq]                                       # [T, 128]
        kv = qkv[:, Wq:]                                      # [T, 128] = K | V

        if qk_norm:
            # Per-head RMSNorm, lane-dense via block-diagonal mean matmuls.
            qvar = jnp.dot(q * q, mq_ref[...],
                           preferred_element_type=jnp.float32)
            q = q * jax.lax.rsqrt(qvar + EPS) * qn_ref[l].astype(jnp.float32)
            kvvar = jnp.dot(kv * kv, mkv_ref[...],
                            preferred_element_type=jnp.float32)
            kv_mult = (jax.lax.rsqrt(kvvar + EPS)
                       * kn_ref[l].astype(jnp.float32)
                       + vpass_ref[...])                      # V lanes: exactly 1
            kv = kv * kv_mult

        q = rope(q, cos_q, s1_q, s2_q)
        kv = rope(kv, cos_kv, s1_kv, s2_kv)                   # V lanes untouched

        # Per-kv-group batched attention (G query heads stacked along rows).
        ctx_parts = []
        for g in range(Hkv):
            qg = jnp.concatenate(
                [q[:, (g * G + j) * hd:(g * G + j + 1) * hd]
                 for j in range(G)], axis=0)                  # [G*T, hd]
            kg = kv[:, g * hd:(g + 1) * hd]                   # [T, hd]
            vg = kv[:, Wk + g * hd:Wk + (g + 1) * hd]         # [T, hd]
            s = jax.lax.dot_general(
                qg, kg, (((1,), (1,)), ((), ())),
                preferred_element_type=jnp.float32) * scale   # [G*T, T]
            s = jnp.where(causal, neg, s)
            m = jnp.max(s, axis=-1, keepdims=True)
            p = jnp.exp(s - m)
            p = p / jnp.sum(p, axis=-1, keepdims=True)        # exact softmax
            cg = jnp.dot(p, vg, preferred_element_type=jnp.float32)
            ctx_parts.extend(cg[j * T:(j + 1) * T, :] for j in range(G))
        ctx = jnp.concatenate(ctx_parts, axis=1)              # [T, Wq] lane-dense

        attn = jnp.dot(ctx.astype(wo_ref.dtype), wo_ref[l],
                       preferred_element_type=jnp.float32)
        x = x + attn

        # -------- feed-forward sub-block: norm + SwiGLU + residual
        h2 = rms(x, norm2_ref[l].astype(jnp.float32))
        a = jnp.dot(h2.astype(w12_ref.dtype), w12_ref[l],
                    preferred_element_type=jnp.float32)       # [T, 2*Dff]
        gate = a[:, :Dff]
        up = a[:, Dff:]
        act = gate * jax.nn.sigmoid(gate) * up
        x = x + jnp.dot(act.astype(w3_ref.dtype), w3_ref[l],
                        preferred_element_type=jnp.float32)

    # -------- final RMSNorm + LM head
    hf = rms(x, fnorm_ref[...].astype(jnp.float32))
    logits = jnp.dot(hf.astype(whead_ref.dtype), whead_ref[...],
                     preferred_element_type=jnp.float32)
    out_ref[0] = logits.astype(out_ref.dtype)


# ------------------------ RoPE / norm constant precompute --------------------

def compute_rope_params(head_dim, theta_base, context_length):
    inv_freq = 1.0 / (
        theta_base ** (jnp.arange(0, head_dim, 2, dtype=jnp.float32) / head_dim)
    )
    positions = jnp.arange(context_length, dtype=jnp.float32)
    angles = positions[:, None] * inv_freq[None, :]
    angles = jnp.concatenate([angles, angles], axis=1)          # (ctx, head_dim)
    return jnp.cos(angles), jnp.sin(angles)


def _rope_multipliers(cos, sin, T, n_tile, hd, total_width):
    """Lane-dense RoPE multipliers: tiled cos plus the sign-folded sin terms for
    the two pltpu.roll directions.  Lanes past n_tile*hd (the V half of the
    combined KV block) get identity multipliers (cos=1, sin=0)."""
    cos_t = jnp.tile(cos[:T], (1, n_tile))
    sin_t = jnp.tile(sin[:T], (1, n_tile))
    lane = jnp.arange(n_tile * hd) % hd
    first = (lane < hd // 2)[None, :]
    s1 = jnp.where(first, -sin_t, 0.0)    # pairs with roll(width - hd//2)
    s2 = jnp.where(first, 0.0, sin_t)     # pairs with roll(hd//2)
    pad = total_width - n_tile * hd
    if pad:
        cos_t = jnp.pad(cos_t, ((0, 0), (0, pad)), constant_values=1.0)
        s1 = jnp.pad(s1, ((0, 0), (0, pad)))
        s2 = jnp.pad(s2, ((0, 0), (0, pad)))
    return cos_t, s1, s2


def _blockdiag_mean(width, hd, active_cols):
    """[width, width] matrix: 1/hd within each hd-sized diagonal block for
    columns < active_cols, 0 elsewhere (lane-dense per-head mean via MXU)."""
    i = jnp.arange(width)
    same_head = (i[:, None] // hd) == (i[None, :] // hd)
    active = i[None, :] < active_cols
    return jnp.where(same_head & active, 1.0 / hd, 0.0).astype(jnp.float32)


# --------------------------- params & forward --------------------------------

def init_params(key, cfg):
    D, V = cfg["emb_dim"], cfg["vocab_size"]
    hd, H, Hkv = cfg["head_dim"], cfg["n_heads"], cfg["n_kv_groups"]
    Dff, L = cfg["hidden_dim"], cfg["n_layers"]
    wdt = cfg["mxu_dtype"]
    keys = jax.random.split(key, L + 2)

    def nrm(k, shape, dt):
        return (jax.random.normal(k, shape, jnp.float32) * 0.02).astype(dt)

    params = {
        "tok_emb": nrm(keys[0], (V, D), jnp.float32),
        "out_head": nrm(keys[1], (D, V), wdt),
        "final_norm": jnp.ones((D,), jnp.float32),
        "blocks": [],
    }
    for l in range(L):
        ks = jax.random.split(keys[2 + l], 4)
        params["blocks"].append(dict(
            wqkv=nrm(ks[0], (D, (H + 2 * Hkv) * hd), wdt),   # [Wq | Wk | Wv]
            wo=nrm(ks[1], (H * hd, D), wdt),
            w12=nrm(ks[2], (D, 2 * Dff), wdt),               # [fc1 | fc2]
            w3=nrm(ks[3], (Dff, D), wdt),
            norm1=jnp.ones((D,), jnp.float32),
            norm2=jnp.ones((D,), jnp.float32),
            q_norm=jnp.ones((hd,), jnp.float32),
            k_norm=jnp.ones((hd,), jnp.float32),
        ))
    return params


def qwen3_forward(params, in_idx, cfg, cos, sin):
    B, T = in_idx.shape
    D, V = cfg["emb_dim"], cfg["vocab_size"]
    H, Hkv, hd = cfg["n_heads"], cfg["n_kv_groups"], cfg["head_dim"]
    Dff, L = cfg["hidden_dim"], cfg["n_layers"]
    Wq, Wk = H * hd, Hkv * hd
    Wkv = 2 * Wk
    out_dt = cfg["dtype"]

    # Token-embedding gather stays in plain JAX (data-dependent gather).
    x = jnp.take(params["tok_emb"], in_idx, axis=0).astype(out_dt)   # [B,T,D]

    # Lane-dense RoPE / norm constants (XLA constant-folds these).
    cos_q, s1_q, s2_q = _rope_multipliers(cos, sin, T, H, hd, Wq)
    cos_kv, s1_kv, s2_kv = _rope_multipliers(cos, sin, T, Hkv, hd, Wkv)
    mq = _blockdiag_mean(Wq, hd, Wq)
    mkv = _blockdiag_mean(Wkv, hd, Wk)
    vpass = jnp.concatenate([jnp.zeros((1, Wk), jnp.float32),
                             jnp.ones((1, Wk), jnp.float32)], axis=1)

    # Stack per-layer weights along a leading L axis so they index statically
    # inside the kernel and stay resident in VMEM across the whole forward.
    blocks = params["blocks"]
    stack = lambda name: jnp.stack([b[name] for b in blocks], axis=0)
    norm1 = stack("norm1")[:, None, :]                                  # [L,1,D]
    norm2 = stack("norm2")[:, None, :]
    qn = jnp.stack([jnp.tile(b["q_norm"], H) for b in blocks])[:, None, :]
    kn = jnp.stack([jnp.concatenate([jnp.tile(b["k_norm"], Hkv),
                                     jnp.zeros((Wk,), jnp.float32)])
                    for b in blocks])[:, None, :]                       # [L,1,Wkv]
    wqkv, wo, w12, w3 = stack("wqkv"), stack("wo"), stack("w12"), stack("w3")

    kern = functools.partial(_qwen3_fused_kernel, L=L, H=H, Hkv=Hkv, hd=hd,
                             T=T, Dff=Dff, qk_norm=cfg["qk_norm"])

    def full_spec(shape):
        n = len(shape)
        return pl.BlockSpec(shape, lambda b: (0,) * n)

    in_arrays = [x, cos_q, s1_q, s2_q, cos_kv, s1_kv, s2_kv, mq, mkv, vpass,
                 norm1, norm2, qn, kn, wqkv, wo, w12, w3,
                 params["final_norm"][None, :], params["out_head"]]
    in_specs = ([pl.BlockSpec((1, T, D), lambda b: (b, 0, 0))]
                + [full_spec(a.shape) for a in in_arrays[1:]])

    logits = pl.pallas_call(
        kern,
        out_shape=jax.ShapeDtypeStruct((B, T, V), out_dt),
        grid=(B,),
        in_specs=in_specs,
        out_specs=pl.BlockSpec((1, T, V), lambda b: (b, 0, 0)),
        compiler_params=pltpu.CompilerParams(
            dimension_semantics=("parallel",)),
    )(*in_arrays)
    return logits


# ------------------------------- main -----------------------------------------

if __name__ == "__main__":
    key = jax.random.PRNGKey(0)
    pkey, ikey = jax.random.split(key)

    params = init_params(pkey, CFG)
    cos, sin = compute_rope_params(
        CFG["head_dim"], CFG["rope_base"], CFG["context_length"]
    )

    B, T = 2, 8
    in_idx = jax.random.randint(ikey, (B, T), 0, CFG["vocab_size"],
                                dtype=jnp.int32)

    @jax.jit
    def run(params, in_idx, cos, sin):
        return qwen3_forward(params, in_idx, CFG, cos, sin)

    logits = run(params, in_idx, cos, sin)
    jax.block_until_ready(logits)

    assert logits.shape == (B, T, CFG["vocab_size"])
    assert bool(jnp.all(jnp.isfinite(logits)))
    print("KERNEL_OK")
</pallas_src>

<mosaic_0001>
module attributes {stable_mosaic.version = 11 : i64} {
  func.func @_qwen3_fused_kernel(%arg0: i32, %arg1: memref<1x8x128xf32, #tpu.memory_space<vmem>>, %arg2: memref<8x128xf32, #tpu.memory_space<vmem>>, %arg3: memref<8x128xf32, #tpu.memory_space<vmem>>, %arg4: memref<8x128xf32, #tpu.memory_space<vmem>>, %arg5: memref<8x128xf32, #tpu.memory_space<vmem>>, %arg6: memref<8x128xf32, #tpu.memory_space<vmem>>, %arg7: memref<8x128xf32, #tpu.memory_space<vmem>>, %arg8: memref<128x128xf32, #tpu.memory_space<vmem>>, %arg9: memref<128x128xf32, #tpu.memory_space<vmem>>, %arg10: memref<1x128xf32, #tpu.memory_space<vmem>>, %arg11: memref<2x1x128xf32, #tpu.memory_space<vmem>>, %arg12: memref<2x1x128xf32, #tpu.memory_space<vmem>>, %arg13: memref<2x1x128xf32, #tpu.memory_space<vmem>>, %arg14: memref<2x1x128xf32, #tpu.memory_space<vmem>>, %arg15: memref<2x128x256xbf16, #tpu.memory_space<vmem>>, %arg16: memref<2x128x128xbf16, #tpu.memory_space<vmem>>, %arg17: memref<2x128x512xbf16, #tpu.memory_space<vmem>>, %arg18: memref<2x256x128xbf16, #tpu.memory_space<vmem>>, %arg19: memref<1x128xf32, #tpu.memory_space<vmem>>, %arg20: memref<128x128xbf16, #tpu.memory_space<vmem>>, %arg21: memref<1x8x128xf32, #tpu.memory_space<vmem>>) attributes {dimension_semantics = [#tpu.dimension_semantics<parallel>], iteration_bounds = array<i64: 2>, scalar_prefetch = 0 : i64, scratch_operands = 0 : i64, tpu.core_type = #tpu.core_type<tc>, window_params = [{transform_indices = @transform_0, window_bounds = array<i64: 1, 8, 128>}, {pipeline_mode = #tpu.pipeline_mode<synchronous>, transform_indices = @transform_1, window_bounds = array<i64: 8, 128>}, {pipeline_mode = #tpu.pipeline_mode<synchronous>, transform_indices = @transform_2, window_bounds = array<i64: 8, 128>}, {pipeline_mode = #tpu.pipeline_mode<synchronous>, transform_indices = @transform_3, window_bounds = array<i64: 8, 128>}, {pipeline_mode = #tpu.pipeline_mode<synchronous>, transform_indices = @transform_4, window_bounds = array<i64: 8, 128>}, {pipeline_mode = #tpu.pipeline_mode<synchronous>, transform_indices = @transform_5, window_bounds = array<i64: 8, 128>}, {pipeline_mode = #tpu.pipeline_mode<synchronous>, transform_indices = @transform_6, window_bounds = array<i64: 8, 128>}, {pipeline_mode = #tpu.pipeline_mode<synchronous>, transform_indices = @transform_7, window_bounds = array<i64: 128, 128>}, {pipeline_mode = #tpu.pipeline_mode<synchronous>, transform_indices = @transform_8, window_bounds = array<i64: 128, 128>}, {pipeline_mode = #tpu.pipeline_mode<synchronous>, transform_indices = @transform_9, window_bounds = array<i64: 1, 128>}, {pipeline_mode = #tpu.pipeline_mode<synchronous>, transform_indices = @transform_10, window_bounds = array<i64: 2, 1, 128>}, {pipeline_mode = #tpu.pipeline_mode<synchronous>, transform_indices = @transform_11, window_bounds = array<i64: 2, 1, 128>}, {pipeline_mode = #tpu.pipeline_mode<synchronous>, transform_indices = @transform_12, window_bounds = array<i64: 2, 1, 128>}, {pipeline_mode = #tpu.pipeline_mode<synchronous>, transform_indices = @transform_13, window_bounds = array<i64: 2, 1, 128>}, {pipeline_mode = #tpu.pipeline_mode<synchronous>, transform_indices = @transform_14, window_bounds = array<i64: 2, 128, 256>}, {pipeline_mode = #tpu.pipeline_mode<synchronous>, transform_indices = @transform_15, window_bounds = array<i64: 2, 128, 128>}, {pipeline_mode = #tpu.pipeline_mode<synchronous>, transform_indices = @transform_16, window_bounds = array<i64: 2, 128, 512>}, {pipeline_mode = #tpu.pipeline_mode<synchronous>, transform_indices = @transform_17, window_bounds = array<i64: 2, 256, 128>}, {pipeline_mode = #tpu.pipeline_mode<synchronous>, transform_indices = @transform_18, window_bounds = array<i64: 1, 128>}, {pipeline_mode = #tpu.pipeline_mode<synchronous>, transform_indices = @transform_19, window_bounds = array<i64: 128, 128>}, {transform_indices = @transform_20, window_bounds = array<i64: 1, 8, 128>}]} {
    %c0 = arith.constant 0 : index
    %c0_0 = arith.constant 0 : index
    %c0_1 = arith.constant 0 : index
    %0 = vector.load %arg1[%c0, %c0_0, %c0_1] : memref<1x8x128xf32, #tpu.memory_space<vmem>>, vector<1x8x128xf32>
    %1 = vector.shape_cast %0 : vector<1x8x128xf32> to vector<8x128xf32>
    %c0_2 = arith.constant 0 : index
    %c0_3 = arith.constant 0 : index
    %2 = vector.load %arg2[%c0_2, %c0_3] : memref<8x128xf32, #tpu.memory_space<vmem>>, vector<8x128xf32>
    %c0_4 = arith.constant 0 : index
    %c0_5 = arith.constant 0 : index
    %3 = vector.load %arg3[%c0_4, %c0_5] : memref<8x128xf32, #tpu.memory_space<vmem>>, vector<8x128xf32>
    %c0_6 = arith.constant 0 : index
    %c0_7 = arith.constant 0 : index
    %4 = vector.load %arg4[%c0_6, %c0_7] : memref<8x128xf32, #tpu.memory_space<vmem>>, vector<8x128xf32>
    %c0_8 = arith.constant 0 : index
    %c0_9 = arith.constant 0 : index
    %5 = vector.load %arg5[%c0_8, %c0_9] : memref<8x128xf32, #tpu.memory_space<vmem>>, vector<8x128xf32>
    %c0_10 = arith.constant 0 : index
    %c0_11 = arith.constant 0 : index
    %6 = vector.load %arg6[%c0_10, %c0_11] : memref<8x128xf32, #tpu.memory_space<vmem>>, vector<8x128xf32>
    %c0_12 = arith.constant 0 : index
    %c0_13 = arith.constant 0 : index
    %7 = vector.load %arg7[%c0_12, %c0_13] : memref<8x128xf32, #tpu.memory_space<vmem>>, vector<8x128xf32>
    %8 = tpu.iota {dimensions = array<i32: 0>} : vector<16x8xi32>
    %c8_i32 = arith.constant 8 : i32
    %c0_i32 = arith.constant 0 : i32
    %9 = arith.cmpi eq, %c8_i32, %c0_i32 : i32
    %c1_i32 = arith.constant 1 : i32
    %10 = arith.select %9, %c1_i32, %c8_i32 : i32
    %11 = vector.broadcast %10 : i32 to vector<16x8xi32>
    %12 = arith.remsi %8, %11 : vector<16x8xi32>
    %c0_i32_14 = arith.constant 0 : i32
    %13 = vector.broadcast %c0_i32_14 : i32 to vector<16x8xi32>
    %14 = arith.cmpi ne, %12, %13 : vector<16x8xi32>
    %c0_i32_15 = arith.constant 0 : i32
    %15 = vector.broadcast %c0_i32_15 : i32 to vector<16x8xi32>
    %16 = arith.cmpi slt, %12, %15 : vector<16x8xi32>
    %c0_i32_16 = arith.constant 0 : i32
    %17 = arith.cmpi slt, %10, %c0_i32_16 : i32
    %18 = vector.broadcast %17 : i1 to vector<16x8xi1>
    %19 = vector.broadcast %18 : vector<16x8xi1> to vector<16x8xi1>
    %20 = arith.xori %16, %19 : vector<16x8xi1>
    %21 = arith.andi %20, %14 : vector<16x8xi1>
    %22 = vector.broadcast %10 : i32 to vector<16x8xi32>
    %23 = arith.addi %12, %22 : vector<16x8xi32>
    %24 = arith.select %21, %23, %12 : vector<16x8xi1>, vector<16x8xi32>
    %25 = tpu.iota {dimensions = array<i32: 1>} : vector<16x8xi32>
    %26 = arith.cmpi sgt, %25, %24 : vector<16x8xi32>
    %c0_17 = arith.constant 0 : index
    %c0_18 = arith.constant 0 : index
    %c0_19 = arith.constant 0 : index
    %27 = vector.load %arg11[%c0_17, %c0_18, %c0_19] : memref<2x1x128xf32, #tpu.memory_space<vmem>>, vector<1x1x128xf32>
    %28 = vector.shape_cast %27 : vector<1x1x128xf32> to vector<1x128xf32>
    %29 = arith.mulf %1, %1 : vector<8x128xf32>
    %cst = arith.constant dense<0.000000e+00> : vector<8xf32>
    %30 = vector.multi_reduction <add>, %29, %cst [1] : vector<8x128xf32> to vector<8xf32>
    %31 = vector.shape_cast %30 : vector<8xf32> to vector<8x1xf32>
    %cst_20 = arith.constant 1.280000e+02 : f32
    %32 = vector.broadcast %cst_20 : f32 to vector<8x1xf32>
    %33 = arith.divf %31, %32 : vector<8x1xf32>
    %cst_21 = arith.constant 9.99999997E-7 : f32
    %34 = vector.broadcast %cst_21 : f32 to vector<8x1xf32>
    %35 = arith.addf %33, %34 : vector<8x1xf32>
    %36 = math.rsqrt %35 : vector<8x1xf32>
    %37 = vector.broadcast %36 : vector<8x1xf32> to vector<8x128xf32>
    %38 = arith.mulf %1, %37 : vector<8x128xf32>
    %39 = vector.broadcast %28 : vector<1x128xf32> to vector<8x128xf32>
    %40 = arith.mulf %38, %39 : vector<8x128xf32>
    %41 = arith.truncf %40 : vector<8x128xf32> to vector<8x128xbf16>
    %c0_22 = arith.constant 0 : index
    %c0_23 = arith.constant 0 : index
    %c0_24 = arith.constant 0 : index
    %42 = vector.load %arg15[%c0_22, %c0_23, %c0_24] : memref<2x128x256xbf16, #tpu.memory_space<vmem>>, vector<1x128x256xbf16>
    %43 = vector.shape_cast %42 : vector<1x128x256xbf16> to vector<128x256xbf16>
    %cst_25 = arith.constant dense<0.000000e+00> : vector<8x256xf32>
    %44 = tpu.matmul %41, %43, %cst_25 {dimension_numbers = #tpu.dot_dimension_numbers<[1], [0], [0], [1], [0, 0, 1, 1], [], []>} : vector<8x128xbf16>, vector<128x256xbf16>, vector<8x256xf32> -> vector<8x256xf32>
    %45 = vector.extract_strided_slice %44 {offsets = [0, 0], sizes = [8, 128], strides = [1, 1]} : vector<8x256xf32> to vector<8x128xf32>
    %46 = vector.extract_strided_slice %44 {offsets = [0, 128], sizes = [8, 128], strides = [1, 1]} : vector<8x256xf32> to vector<8x128xf32>
    %47 = arith.mulf %45, %45 : vector<8x128xf32>
    %c0_26 = arith.constant 0 : index
    %c0_27 = arith.constant 0 : index
    %48 = vector.load %arg8[%c0_26, %c0_27] : memref<128x128xf32, #tpu.memory_space<vmem>>, vector<128x128xf32>
    %cst_28 = arith.constant dense<0.000000e+00> : vector<8x128xf32>
    %49 = tpu.matmul %47, %48, %cst_28 {dimension_numbers = #tpu.dot_dimension_numbers<[1], [0], [0], [1], [0, 0, 1, 1], [], []>} : vector<8x128xf32>, vector<128x128xf32>, vector<8x128xf32> -> vector<8x128xf32>
    %cst_29 = arith.constant 9.99999997E-7 : f32
    %50 = vector.broadcast %cst_29 : f32 to vector<8x128xf32>
    %51 = arith.addf %49, %50 : vector<8x128xf32>
    %52 = math.rsqrt %51 : vector<8x128xf32>
    %53 = arith.mulf %45, %52 : vector<8x128xf32>
    %c0_30 = arith.constant 0 : index
    %c0_31 = arith.constant 0 : index
    %c0_32 = arith.constant 0 : index
    %54 = vector.load %arg13[%c0_30, %c0_31, %c0_32] : memref<2x1x128xf32, #tpu.memory_space<vmem>>, vector<1x1x128xf32>
    %55 = vector.shape_cast %54 : vector<1x1x128xf32> to vector<1x128xf32>
    %56 = vector.broadcast %55 : vector<1x128xf32> to vector<8x128xf32>
    %57 = arith.mulf %53, %56 : vector<8x128xf32>
    %58 = arith.mulf %46, %46 : vector<8x128xf32>
    %c0_33 = arith.constant 0 : index
    %c0_34 = arith.constant 0 : index
    %59 = vector.load %arg9[%c0_33, %c0_34] : memref<128x128xf32, #tpu.memory_space<vmem>>, vector<128x128xf32>
    %cst_35 = arith.constant dense<0.000000e+00> : vector<8x128xf32>
    %60 = tpu.matmul %58, %59, %cst_35 {dimension_numbers = #tpu.dot_dimension_numbers<[1], [0], [0], [1], [0, 0, 1, 1], [], []>} : vector<8x128xf32>, vector<128x128xf32>, vector<8x128xf32> -> vector<8x128xf32>
    %cst_36 = arith.constant 9.99999997E-7 : f32
    %61 = vector.broadcast %cst_36 : f32 to vector<8x128xf32>
    %62 = arith.addf %60, %61 : vector<8x128xf32>
    %63 = math.rsqrt %62 : vector<8x128xf32>
    %c0_37 = arith.constant 0 : index
    %c0_38 = arith.constant 0 : index
    %c0_39 = arith.constant 0 : index
    %64 = vector.load %arg14[%c0_37, %c0_38, %c0_39] : memref<2x1x128xf32, #tpu.memory_space<vmem>>, vector<1x1x128xf32>
    %65 = vector.shape_cast %64 : vector<1x1x128xf32> to vector<1x128xf32>
    %66 = vector.broadcast %65 : vector<1x128xf32> to vector<8x128xf32>
    %67 = arith.mulf %63, %66 : vector<8x128xf32>
    %c0_40 = arith.constant 0 : index
    %c0_41 = arith.constant 0 : index
    %68 = vector.load %arg10[%c0_40, %c0_41] : memref<1x128xf32, #tpu.memory_space<vmem>>, vector<1x128xf32>
    %69 = vector.broadcast %68 : vector<1x128xf32> to vector<8x128xf32>
    %70 = arith.addf %67, %69 : vector<8x128xf32>
    %71 = arith.mulf %46, %70 : vector<8x128xf32>
    %72 = arith.mulf %57, %2 : vector<8x128xf32>
    %c112_i32 = arith.constant 112 : i32
    %73 = tpu.dynamic_rotate %57 by %c112_i32 dim 1 : vector<8x128xf32>, i32 -> vector<8x128xf32>
    %74 = arith.mulf %73, %3 : vector<8x128xf32>
    %75 = arith.addf %72, %74 : vector<8x128xf32>
    %c16_i32 = arith.constant 16 : i32
    %76 = tpu.dynamic_rotate %57 by %c16_i32 dim 1 : vector<8x128xf32>, i32 -> vector<8x128xf32>
    %77 = arith.mulf %76, %4 : vector<8x128xf32>
    %78 = arith.addf %75, %77 : vector<8x128xf32>
    %79 = arith.mulf %71, %5 : vector<8x128xf32>
    %c112_i32_42 = arith.constant 112 : i32
    %80 = tpu.dynamic_rotate %71 by %c112_i32_42 dim 1 : vector<8x128xf32>, i32 -> vector<8x128xf32>
    %81 = arith.mulf %80, %6 : vector<8x128xf32>
    %82 = arith.addf %79, %81 : vector<8x128xf32>
    %c16_i32_43 = arith.constant 16 : i32
    %83 = tpu.dynamic_rotate %71 by %c16_i32_43 dim 1 : vector<8x128xf32>, i32 -> vector<8x128xf32>
    %84 = arith.mulf %83, %7 : vector<8x128xf32>
    %85 = arith.addf %82, %84 : vector<8x128xf32>
    %86 = vector.extract_strided_slice %78 {offsets = [0, 0], sizes = [8, 32], strides = [1, 1]} : vector<8x128xf32> to vector<8x32xf32>
    %87 = vector.extract_strided_slice %78 {offsets = [0, 32], sizes = [8, 32], strides = [1, 1]} : vector<8x128xf32> to vector<8x32xf32>
    %88 = tpu.concatenate %86, %87 in 0 : vector<8x32xf32>, vector<8x32xf32> -> vector<16x32xf32>
    %89 = vector.extract_strided_slice %85 {offsets = [0, 0], sizes = [8, 32], strides = [1, 1]} : vector<8x128xf32> to vector<8x32xf32>
    %90 = vector.extract_strided_slice %85 {offsets = [0, 64], sizes = [8, 32], strides = [1, 1]} : vector<8x128xf32> to vector<8x32xf32>
    %cst_44 = arith.constant dense<0.000000e+00> : vector<16x8xf32>
    %91 = tpu.matmul %88, %89, %cst_44 {dimension_numbers = #tpu.dot_dimension_numbers<[1], [1], [0], [0], [0, 0, 1, 0], [], []>} : vector<16x32xf32>, vector<8x32xf32>, vector<16x8xf32> -> vector<16x8xf32>
    %cst_45 = arith.constant 0.176776692 : f32
    %92 = vector.broadcast %cst_45 : f32 to vector<16x8xf32>
    %93 = arith.mulf %91, %92 : vector<16x8xf32>
    %cst_46 = arith.constant -1.000000e+30 : f32
    %94 = vector.broadcast %cst_46 : f32 to vector<16x8xf32>
    %95 = arith.select %26, %94, %93 : vector<16x8xi1>, vector<16x8xf32>
    %cst_47 = arith.constant dense<0xFF800000> : vector<16xf32>
    %96 = vector.multi_reduction <maximumf>, %95, %cst_47 [1] : vector<16x8xf32> to vector<16xf32>
    %97 = vector.shape_cast %96 : vector<16xf32> to vector<16x1xf32>
    %98 = vector.broadcast %97 : vector<16x1xf32> to vector<16x8xf32>
    %99 = arith.subf %95, %98 : vector<16x8xf32>
    %100 = math.exp %99 : vector<16x8xf32>
    %cst_48 = arith.constant dense<0.000000e+00> : vector<16xf32>
    %101 = vector.multi_reduction <add>, %100, %cst_48 [1] : vector<16x8xf32> to vector<16xf32>
    %102 = vector.shape_cast %101 : vector<16xf32> to vector<16x1xf32>
    %103 = vector.broadcast %102 : vector<16x1xf32> to vector<16x8xf32>
    %104 = arith.divf %100, %103 : vector<16x8xf32>
    %cst_49 = arith.constant dense<0.000000e+00> : vector<16x32xf32>
    %105 = tpu.matmul %104, %90, %cst_49 {dimension_numbers = #tpu.dot_dimension_numbers<[1], [0], [0], [1], [0, 0, 1, 1], [], []>} : vector<16x8xf32>, vector<8x32xf32>, vector<16x32xf32> -> vector<16x32xf32>
    %106 = vector.extract_strided_slice %105 {offsets = [0, 0], sizes = [8, 32], strides = [1, 1]} : vector<16x32xf32> to vector<8x32xf32>
    %107 = vector.extract_strided_slice %105 {offsets = [8, 0], sizes = [8, 32], strides = [1, 1]} : vector<16x32xf32> to vector<8x32xf32>
    %108 = vector.extract_strided_slice %78 {offsets = [0, 64], sizes = [8, 32], strides = [1, 1]} : vector<8x128xf32> to vector<8x32xf32>
    %109 = vector.extract_strided_slice %78 {offsets = [0, 96], sizes = [8, 32], strides = [1, 1]} : vector<8x128xf32> to vector<8x32xf32>
    %110 = tpu.concatenate %108, %109 in 0 : vector<8x32xf32>, vector<8x32xf32> -> vector<16x32xf32>
    %111 = vector.extract_strided_slice %85 {offsets = [0, 32], sizes = [8, 32], strides = [1, 1]} : vector<8x128xf32> to vector<8x32xf32>
    %112 = vector.extract_strided_slice %85 {offsets = [0, 96], sizes = [8, 32], strides = [1, 1]} : vector<8x128xf32> to vector<8x32xf32>
    %cst_50 = arith.constant dense<0.000000e+00> : vector<16x8xf32>
    %113 = tpu.matmul %110, %111, %cst_50 {dimension_numbers = #tpu.dot_dimension_numbers<[1], [1], [0], [0], [0, 0, 1, 0], [], []>} : vector<16x32xf32>, vector<8x32xf32>, vector<16x8xf32> -> vector<16x8xf32>
    %cst_51 = arith.constant 0.176776692 : f32
    %114 = vector.broadcast %cst_51 : f32 to vector<16x8xf32>
    %115 = arith.mulf %113, %114 : vector<16x8xf32>
    %cst_52 = arith.constant -1.000000e+30 : f32
    %116 = vector.broadcast %cst_52 : f32 to vector<16x8xf32>
    %117 = arith.select %26, %116, %115 : vector<16x8xi1>, vector<16x8xf32>
    %cst_53 = arith.constant dense<0xFF800000> : vector<16xf32>
    %118 = vector.multi_reduction <maximumf>, %117, %cst_53 [1] : vector<16x8xf32> to vector<16xf32>
    %119 = vector.shape_cast %118 : vector<16xf32> to vector<16x1xf32>
    %120 = vector.broadcast %119 : vector<16x1xf32> to vector<16x8xf32>
    %121 = arith.subf %117, %120 : vector<16x8xf32>
    %122 = math.exp %121 : vector<16x8xf32>
    %cst_54 = arith.constant dense<0.000000e+00> : vector<16xf32>
    %123 = vector.multi_reduction <add>, %122, %cst_54 [1] : vector<16x8xf32> to vector<16xf32>
    %124 = vector.shape_cast %123 : vector<16xf32> to vector<16x1xf32>
    %125 = vector.broadcast %124 : vector<16x1xf32> to vector<16x8xf32>
    %126 = arith.divf %122, %125 : vector<16x8xf32>
    %cst_55 = arith.constant dense<0.000000e+00> : vector<16x32xf32>
    %127 = tpu.matmul %126, %112, %cst_55 {dimension_numbers = #tpu.dot_dimension_numbers<[1], [0], [0], [1], [0, 0, 1, 1], [], []>} : vector<16x8xf32>, vector<8x32xf32>, vector<16x32xf32> -> vector<16x32xf32>
    %128 = vector.extract_strided_slice %127 {offsets = [0, 0], sizes = [8, 32], strides = [1, 1]} : vector<16x32xf32> to vector<8x32xf32>
    %129 = vector.extract_strided_slice %127 {offsets = [8, 0], sizes = [8, 32], strides = [1, 1]} : vector<16x32xf32> to vector<8x32xf32>
    %130 = tpu.concatenate %106, %107, %128, %129 in 1 : vector<8x32xf32>, vector<8x32xf32>, vector<8x32xf32>, vector<8x32xf32> -> vector<8x128xf32>
    %131 = arith.truncf %130 : vector<8x128xf32> to vector<8x128xbf16>
    %c0_56 = arith.constant 0 : index
    %c0_57 = arith.constant 0 : index
    %c0_58 = arith.constant 0 : index
    %132 = vector.load %arg16[%c0_56, %c0_57, %c0_58] : memref<2x128x128xbf16, #tpu.memory_space<vmem>>, vector<1x128x128xbf16>
    %133 = vector.shape_cast %132 : vector<1x128x128xbf16> to vector<128x128xbf16>
    %cst_59 = arith.constant dense<0.000000e+00> : vector<8x128xf32>
    %134 = tpu.matmul %131, %133, %cst_59 {dimension_numbers = #tpu.dot_dimension_numbers<[1], [0], [0], [1], [0, 0, 1, 1], [], []>} : vector<8x128xbf16>, vector<128x128xbf16>, vector<8x128xf32> -> vector<8x128xf32>
    %135 = arith.addf %1, %134 : vector<8x128xf32>
    %c0_60 = arith.constant 0 : index
    %c0_61 = arith.constant 0 : index
    %c0_62 = arith.constant 0 : index
    %136 = vector.load %arg12[%c0_60, %c0_61, %c0_62] : memref<2x1x128xf32, #tpu.memory_space<vmem>>, vector<1x1x128xf32>
    %137 = vector.shape_cast %136 : vector<1x1x128xf32> to vector<1x128xf32>
    %138 = arith.mulf %135, %135 : vector<8x128xf32>
    %cst_63 = arith.constant dense<0.000000e+00> : vector<8xf32>
    %139 = vector.multi_reduction <add>, %138, %cst_63 [1] : vector<8x128xf32> to vector<8xf32>
    %140 = vector.shape_cast %139 : vector<8xf32> to vector<8x1xf32>
    %cst_64 = arith.constant 1.280000e+02 : f32
    %141 = vector.broadcast %cst_64 : f32 to vector<8x1xf32>
    %142 = arith.divf %140, %141 : vector<8x1xf32>
    %cst_65 = arith.constant 9.99999997E-7 : f32
    %143 = vector.broadcast %cst_65 : f32 to vector<8x1xf32>
    %144 = arith.addf %142, %143 : vector<8x1xf32>
    %145 = math.rsqrt %144 : vector<8x1xf32>
    %146 = vector.broadcast %145 : vector<8x1xf32> to vector<8x128xf32>
    %147 = arith.mulf %135, %146 : vector<8x128xf32>
    %148 = vector.broadcast %137 : vector<1x128xf32> to vector<8x128xf32>
    %149 = arith.mulf %147, %148 : vector<8x128xf32>
    %150 = arith.truncf %149 : vector<8x128xf32> to vector<8x128xbf16>
    %c0_66 = arith.constant 0 : index
    %c0_67 = arith.constant 0 : index
    %c0_68 = arith.constant 0 : index
    %151 = vector.load %arg17[%c0_66, %c0_67, %c0_68] : memref<2x128x512xbf16, #tpu.memory_space<vmem>>, vector<1x128x512xbf16>
    %152 = vector.shape_cast %151 : vector<1x128x512xbf16> to vector<128x512xbf16>
    %cst_69 = arith.constant dense<0.000000e+00> : vector<8x512xf32>
    %153 = tpu.matmul %150, %152, %cst_69 {dimension_numbers = #tpu.dot_dimension_numbers<[1], [0], [0], [1], [0, 0, 1, 1], [], []>} : vector<8x128xbf16>, vector<128x512xbf16>, vector<8x512xf32> -> vector<8x512xf32>
    %154 = vector.extract_strided_slice %153 {offsets = [0, 0], sizes = [8, 256], strides = [1, 1]} : vector<8x512xf32> to vector<8x256xf32>
    %155 = vector.extract_strided_slice %153 {offsets = [0, 256], sizes = [8, 256], strides = [1, 1]} : vector<8x512xf32> to vector<8x256xf32>
    %156 = arith.negf %154 : vector<8x256xf32>
    %157 = math.exp %156 : vector<8x256xf32>
    %cst_70 = arith.constant 1.000000e+00 : f32
    %158 = vector.broadcast %cst_70 : f32 to vector<8x256xf32>
    %159 = arith.addf %158, %157 : vector<8x256xf32>
    %160 = arith.divf %158, %159 : vector<8x256xf32>
    %161 = arith.mulf %154, %160 : vector<8x256xf32>
    %162 = arith.mulf %161, %155 : vector<8x256xf32>
    %163 = arith.truncf %162 : vector<8x256xf32> to vector<8x256xbf16>
    %c0_71 = arith.constant 0 : index
    %c0_72 = arith.constant 0 : index
    %c0_73 = arith.constant 0 : index
    %164 = vector.load %arg18[%c0_71, %c0_72, %c0_73] : memref<2x256x128xbf16, #tpu.memory_space<vmem>>, vector<1x256x128xbf16>
    %165 = vector.shape_cast %164 : vector<1x256x128xbf16> to vector<256x128xbf16>
    %cst_74 = arith.constant dense<0.000000e+00> : vector<8x128xf32>
    %166 = tpu.matmul %163, %165, %cst_74 {dimension_numbers = #tpu.dot_dimension_numbers<[1], [0], [0], [1], [0, 0, 1, 1], [], []>} : vector<8x256xbf16>, vector<256x128xbf16>, vector<8x128xf32> -> vector<8x128xf32>
    %167 = arith.addf %135, %166 : vector<8x128xf32>
    %c1 = arith.constant 1 : index
    %c0_75 = arith.constant 0 : index
    %c0_76 = arith.constant 0 : index
    %168 = vector.load %arg11[%c1, %c0_75, %c0_76] : memref<2x1x128xf32, #tpu.memory_space<vmem>>, vector<1x1x128xf32>
    %169 = vector.shape_cast %168 : vector<1x1x128xf32> to vector<1x128xf32>
    %170 = arith.mulf %167, %167 : vector<8x128xf32>
    %cst_77 = arith.constant dense<0.000000e+00> : vector<8xf32>
    %171 = vector.multi_reduction <add>, %170, %cst_77 [1] : vector<8x128xf32> to vector<8xf32>
    %172 = vector.shape_cast %171 : vector<8xf32> to vector<8x1xf32>
    %cst_78 = arith.constant 1.280000e+02 : f32
    %173 = vector.broadcast %cst_78 : f32 to vector<8x1xf32>
    %174 = arith.divf %172, %173 : vector<8x1xf32>
    %cst_79 = arith.constant 9.99999997E-7 : f32
    %175 = vector.broadcast %cst_79 : f32 to vector<8x1xf32>
    %176 = arith.addf %174, %175 : vector<8x1xf32>
    %177 = math.rsqrt %176 : vector<8x1xf32>
    %178 = vector.broadcast %177 : vector<8x1xf32> to vector<8x128xf32>
    %179 = arith.mulf %167, %178 : vector<8x128xf32>
    %180 = vector.broadcast %169 : vector<1x128xf32> to vector<8x128xf32>
    %181 = arith.mulf %179, %180 : vector<8x128xf32>
    %182 = arith.truncf %181 : vector<8x128xf32> to vector<8x128xbf16>
    %c1_80 = arith.constant 1 : index
    %c0_81 = arith.constant 0 : index
    %c0_82 = arith.constant 0 : index
    %183 = vector.load %arg15[%c1_80, %c0_81, %c0_82] : memref<2x128x256xbf16, #tpu.memory_space<vmem>>, vector<1x128x256xbf16>
    %184 = vector.shape_cast %183 : vector<1x128x256xbf16> to vector<128x256xbf16>
    %cst_83 = arith.constant dense<0.000000e+00> : vector<8x256xf32>
    %185 = tpu.matmul %182, %184, %cst_83 {dimension_numbers = #tpu.dot_dimension_numbers<[1], [0], [0], [1], [0, 0, 1, 1], [], []>} : vector<8x128xbf16>, vector<128x256xbf16>, vector<8x256xf32> -> vector<8x256xf32>
    %186 = vector.extract_strided_slice %185 {offsets = [0, 0], sizes = [8, 128], strides = [1, 1]} : vector<8x256xf32> to vector<8x128xf32>
    %187 = vector.extract_strided_slice %185 {offsets = [0, 128], sizes = [8, 128], strides = [1, 1]} : vector<8x256xf32> to vector<8x128xf32>
    %188 = arith.mulf %186, %186 : vector<8x128xf32>
    %c0_84 = arith.constant 0 : index
    %c0_85 = arith.constant 0 : index
    %189 = vector.load %arg8[%c0_84, %c0_85] : memref<128x128xf32, #tpu.memory_space<vmem>>, vector<128x128xf32>
    %cst_86 = arith.constant dense<0.000000e+00> : vector<8x128xf32>
    %190 = tpu.matmul %188, %189, %cst_86 {dimension_numbers = #tpu.dot_dimension_numbers<[1], [0], [0], [1], [0, 0, 1, 1], [], []>} : vector<8x128xf32>, vector<128x128xf32>, vector<8x128xf32> -> vector<8x128xf32>
    %cst_87 = arith.constant 9.99999997E-7 : f32
    %191 = vector.broadcast %cst_87 : f32 to vector<8x128xf32>
    %192 = arith.addf %190, %191 : vector<8x128xf32>
    %193 = math.rsqrt %192 : vector<8x128xf32>
    %194 = arith.mulf %186, %193 : vector<8x128xf32>
    %c1_88 = arith.constant 1 : index
    %c0_89 = arith.constant 0 : index
    %c0_90 = arith.constant 0 : index
    %195 = vector.load %arg13[%c1_88, %c0_89, %c0_90] : memref<2x1x128xf32, #tpu.memory_space<vmem>>, vector<1x1x128xf32>
    %196 = vector.shape_cast %195 : vector<1x1x128xf32> to vector<1x128xf32>
    %197 = vector.broadcast %196 : vector<1x128xf32> to vector<8x128xf32>
    %198 = arith.mulf %194, %197 : vector<8x128xf32>
    %199 = arith.mulf %187, %187 : vector<8x128xf32>
    %c0_91 = arith.constant 0 : index
    %c0_92 = arith.constant 0 : index
    %200 = vector.load %arg9[%c0_91, %c0_92] : memref<128x128xf32, #tpu.memory_space<vmem>>, vector<128x128xf32>
    %cst_93 = arith.constant dense<0.000000e+00> : vector<8x128xf32>
    %201 = tpu.matmul %199, %200, %cst_93 {dimension_numbers = #tpu.dot_dimension_numbers<[1], [0], [0], [1], [0, 0, 1, 1], [], []>} : vector<8x128xf32>, vector<128x128xf32>, vector<8x128xf32> -> vector<8x128xf32>
    %cst_94 = arith.constant 9.99999997E-7 : f32
    %202 = vector.broadcast %cst_94 : f32 to vector<8x128xf32>
    %203 = arith.addf %201, %202 : vector<8x128xf32>
    %204 = math.rsqrt %203 : vector<8x128xf32>
    %c1_95 = arith.constant 1 : index
    %c0_96 = arith.constant 0 : index
    %c0_97 = arith.constant 0 : index
    %205 = vector.load %arg14[%c1_95, %c0_96, %c0_97] : memref<2x1x128xf32, #tpu.memory_space<vmem>>, vector<1x1x128xf32>
    %206 = vector.shape_cast %205 : vector<1x1x128xf32> to vector<1x128xf32>
    %207 = vector.broadcast %206 : vector<1x128xf32> to vector<8x128xf32>
    %208 = arith.mulf %204, %207 : vector<8x128xf32>
    %c0_98 = arith.constant 0 : index
    %c0_99 = arith.constant 0 : index
    %209 = vector.load %arg10[%c0_98, %c0_99] : memref<1x128xf32, #tpu.memory_space<vmem>>, vector<1x128xf32>
    %210 = vector.broadcast %209 : vector<1x128xf32> to vector<8x128xf32>
    %211 = arith.addf %208, %210 : vector<8x128xf32>
    %212 = arith.mulf %187, %211 : vector<8x128xf32>
    %213 = arith.mulf %198, %2 : vector<8x128xf32>
    %c112_i32_100 = arith.constant 112 : i32
    %214 = tpu.dynamic_rotate %198 by %c112_i32_100 dim 1 : vector<8x128xf32>, i32 -> vector<8x128xf32>
    %215 = arith.mulf %214, %3 : vector<8x128xf32>
    %216 = arith.addf %213, %215 : vector<8x128xf32>
    %c16_i32_101 = arith.constant 16 : i32
    %217 = tpu.dynamic_rotate %198 by %c16_i32_101 dim 1 : vector<8x128xf32>, i32 -> vector<8x128xf32>
    %218 = arith.mulf %217, %4 : vector<8x128xf32>
    %219 = arith.addf %216, %218 : vector<8x128xf32>
    %220 = arith.mulf %212, %5 : vector<8x128xf32>
    %c112_i32_102 = arith.constant 112 : i32
    %221 = tpu.dynamic_rotate %212 by %c112_i32_102 dim 1 : vector<8x128xf32>, i32 -> vector<8x128xf32>
    %222 = arith.mulf %221, %6 : vector<8x128xf32>
    %223 = arith.addf %220, %222 : vector<8x128xf32>
    %c16_i32_103 = arith.constant 16 : i32
    %224 = tpu.dynamic_rotate %212 by %c16_i32_103 dim 1 : vector<8x128xf32>, i32 -> vector<8x128xf32>
    %225 = arith.mulf %224, %7 : vector<8x128xf32>
    %226 = arith.addf %223, %225 : vector<8x128xf32>
    %227 = vector.extract_strided_slice %219 {offsets = [0, 0], sizes = [8, 32], strides = [1, 1]} : vector<8x128xf32> to vector<8x32xf32>
    %228 = vector.extract_strided_slice %219 {offsets = [0, 32], sizes = [8, 32], strides = [1, 1]} : vector<8x128xf32> to vector<8x32xf32>
    %229 = tpu.concatenate %227, %228 in 0 : vector<8x32xf32>, vector<8x32xf32> -> vector<16x32xf32>
    %230 = vector.extract_strided_slice %226 {offsets = [0, 0], sizes = [8, 32], strides = [1, 1]} : vector<8x128xf32> to vector<8x32xf32>
    %231 = vector.extract_strided_slice %226 {offsets = [0, 64], sizes = [8, 32], strides = [1, 1]} : vector<8x128xf32> to vector<8x32xf32>
    %cst_104 = arith.constant dense<0.000000e+00> : vector<16x8xf32>
    %232 = tpu.matmul %229, %230, %cst_104 {dimension_numbers = #tpu.dot_dimension_numbers<[1], [1], [0], [0], [0, 0, 1, 0], [], []>} : vector<16x32xf32>, vector<8x32xf32>, vector<16x8xf32> -> vector<16x8xf32>
    %cst_105 = arith.constant 0.176776692 : f32
    %233 = vector.broadcast %cst_105 : f32 to vector<16x8xf32>
    %234 = arith.mulf %232, %233 : vector<16x8xf32>
    %cst_106 = arith.constant -1.000000e+30 : f32
    %235 = vector.broadcast %cst_106 : f32 to vector<16x8xf32>
    %236 = arith.select %26, %235, %234 : vector<16x8xi1>, vector<16x8xf32>
    %cst_107 = arith.constant dense<0xFF800000> : vector<16xf32>
    %237 = vector.multi_reduction <maximumf>, %236, %cst_107 [1] : vector<16x8xf32> to vector<16xf32>
    %238 = vector.shape_cast %237 : vector<16xf32> to vector<16x1xf32>
    %239 = vector.broadcast %238 : vector<16x1xf32> to vector<16x8xf32>
    %240 = arith.subf %236, %239 : vector<16x8xf32>
    %241 = math.exp %240 : vector<16x8xf32>
    %cst_108 = arith.constant dense<0.000000e+00> : vector<16xf32>
    %242 = vector.multi_reduction <add>, %241, %cst_108 [1] : vector<16x8xf32> to vector<16xf32>
    %243 = vector.shape_cast %242 : vector<16xf32> to vector<16x1xf32>
    %244 = vector.broadcast %243 : vector<16x1xf32> to vector<16x8xf32>
    %245 = arith.divf %241, %244 : vector<16x8xf32>
    %cst_109 = arith.constant dense<0.000000e+00> : vector<16x32xf32>
    %246 = tpu.matmul %245, %231, %cst_109 {dimension_numbers = #tpu.dot_dimension_numbers<[1], [0], [0], [1], [0, 0, 1, 1], [], []>} : vector<16x8xf32>, vector<8x32xf32>, vector<16x32xf32> -> vector<16x32xf32>
    %247 = vector.extract_strided_slice %246 {offsets = [0, 0], sizes = [8, 32], strides = [1, 1]} : vector<16x32xf32> to vector<8x32xf32>
    %248 = vector.extract_strided_slice %246 {offsets = [8, 0], sizes = [8, 32], strides = [1, 1]} : vector<16x32xf32> to vector<8x32xf32>
    %249 = vector.extract_strided_slice %219 {offsets = [0, 64], sizes = [8, 32], strides = [1, 1]} : vector<8x128xf32> to vector<8x32xf32>
    %250 = vector.extract_strided_slice %219 {offsets = [0, 96], sizes = [8, 32], strides = [1, 1]} : vector<8x128xf32> to vector<8x32xf32>
    %251 = tpu.concatenate %249, %250 in 0 : vector<8x32xf32>, vector<8x32xf32> -> vector<16x32xf32>
    %252 = vector.extract_strided_slice %226 {offsets = [0, 32], sizes = [8, 32], strides = [1, 1]} : vector<8x128xf32> to vector<8x32xf32>
    %253 = vector.extract_strided_slice %226 {offsets = [0, 96], sizes = [8, 32], strides = [1, 1]} : vector<8x128xf32> to vector<8x32xf32>
    %cst_110 = arith.constant dense<0.000000e+00> : vector<16x8xf32>
    %254 = tpu.matmul %251, %252, %cst_110 {dimension_numbers = #tpu.dot_dimension_numbers<[1], [1], [0], [0], [0, 0, 1, 0], [], []>} : vector<16x32xf32>, vector<8x32xf32>, vector<16x8xf32> -> vector<16x8xf32>
    %cst_111 = arith.constant 0.176776692 : f32
    %255 = vector.broadcast %cst_111 : f32 to vector<16x8xf32>
    %256 = arith.mulf %254, %255 : vector<16x8xf32>
    %cst_112 = arith.constant -1.000000e+30 : f32
    %257 = vector.broadcast %cst_112 : f32 to vector<16x8xf32>
    %258 = arith.select %26, %257, %256 : vector<16x8xi1>, vector<16x8xf32>
    %cst_113 = arith.constant dense<0xFF800000> : vector<16xf32>
    %259 = vector.multi_reduction <maximumf>, %258, %cst_113 [1] : vector<16x8xf32> to vector<16xf32>
    %260 = vector.shape_cast %259 : vector<16xf32> to vector<16x1xf32>
    %261 = vector.broadcast %260 : vector<16x1xf32> to vector<16x8xf32>
    %262 = arith.subf %258, %261 : vector<16x8xf32>
    %263 = math.exp %262 : vector<16x8xf32>
    %cst_114 = arith.constant dense<0.000000e+00> : vector<16xf32>
    %264 = vector.multi_reduction <add>, %263, %cst_114 [1] : vector<16x8xf32> to vector<16xf32>
    %265 = vector.shape_cast %264 : vector<16xf32> to vector<16x1xf32>
    %266 = vector.broadcast %265 : vector<16x1xf32> to vector<16x8xf32>
    %267 = arith.divf %263, %266 : vector<16x8xf32>
    %cst_115 = arith.constant dense<0.000000e+00> : vector<16x32xf32>
    %268 = tpu.matmul %267, %253, %cst_115 {dimension_numbers = #tpu.dot_dimension_numbers<[1], [0], [0], [1], [0, 0, 1, 1], [], []>} : vector<16x8xf32>, vector<8x32xf32>, vector<16x32xf32> -> vector<16x32xf32>
    %269 = vector.extract_strided_slice %268 {offsets = [0, 0], sizes = [8, 32], strides = [1, 1]} : vector<16x32xf32> to vector<8x32xf32>
    %270 = vector.extract_strided_slice %268 {offsets = [8, 0], sizes = [8, 32], strides = [1, 1]} : vector<16x32xf32> to vector<8x32xf32>
    %271 = tpu.concatenate %247, %248, %269, %270 in 1 : vector<8x32xf32>, vector<8x32xf32>, vector<8x32xf32>, vector<8x32xf32> -> vector<8x128xf32>
    %272 = arith.truncf %271 : vector<8x128xf32> to vector<8x128xbf16>
    %c1_116 = arith.constant 1 : index
    %c0_117 = arith.constant 0 : index
    %c0_118 = arith.constant 0 : index
    %273 = vector.load %arg16[%c1_116, %c0_117, %c0_118] : memref<2x128x128xbf16, #tpu.memory_space<vmem>>, vector<1x128x128xbf16>
    %274 = vector.shape_cast %273 : vector<1x128x128xbf16> to vector<128x128xbf16>
    %cst_119 = arith.constant dense<0.000000e+00> : vector<8x128xf32>
    %275 = tpu.matmul %272, %274, %cst_119 {dimension_numbers = #tpu.dot_dimension_numbers<[1], [0], [0], [1], [0, 0, 1, 1], [], []>} : vector<8x128xbf16>, vector<128x128xbf16>, vector<8x128xf32> -> vector<8x128xf32>
    %276 = arith.addf %167, %275 : vector<8x128xf32>
    %c1_120 = arith.constant 1 : index
    %c0_121 = arith.constant 0 : index
    %c0_122 = arith.constant 0 : index
    %277 = vector.load %arg12[%c1_120, %c0_121, %c0_122] : memref<2x1x128xf32, #tpu.memory_space<vmem>>, vector<1x1x128xf32>
    %278 = vector.shape_cast %277 : vector<1x1x128xf32> to vector<1x128xf32>
    %279 = arith.mulf %276, %276 : vector<8x128xf32>
    %cst_123 = arith.constant dense<0.000000e+00> : vector<8xf32>
    %280 = vector.multi_reduction <add>, %279, %cst_123 [1] : vector<8x128xf32> to vector<8xf32>
    %281 = vector.shape_cast %280 : vector<8xf32> to vector<8x1xf32>
    %cst_124 = arith.constant 1.280000e+02 : f32
    %282 = vector.broadcast %cst_124 : f32 to vector<8x1xf32>
    %283 = arith.divf %281, %282 : vector<8x1xf32>
    %cst_125 = arith.constant 9.99999997E-7 : f32
    %284 = vector.broadcast %cst_125 : f32 to vector<8x1xf32>
    %285 = arith.addf %283, %284 : vector<8x1xf32>
    %286 = math.rsqrt %285 : vector<8x1xf32>
    %287 = vector.broadcast %286 : vector<8x1xf32> to vector<8x128xf32>
    %288 = arith.mulf %276, %287 : vector<8x128xf32>
    %289 = vector.broadcast %278 : vector<1x128xf32> to vector<8x128xf32>
    %290 = arith.mulf %288, %289 : vector<8x128xf32>
    %291 = arith.truncf %290 : vector<8x128xf32> to vector<8x128xbf16>
    %c1_126 = arith.constant 1 : index
    %c0_127 = arith.constant 0 : index
    %c0_128 = arith.constant 0 : index
    %292 = vector.load %arg17[%c1_126, %c0_127, %c0_128] : memref<2x128x512xbf16, #tpu.memory_space<vmem>>, vector<1x128x512xbf16>
    %293 = vector.shape_cast %292 : vector<1x128x512xbf16> to vector<128x512xbf16>
    %cst_129 = arith.constant dense<0.000000e+00> : vector<8x512xf32>
    %294 = tpu.matmul %291, %293, %cst_129 {dimension_numbers = #tpu.dot_dimension_numbers<[1], [0], [0], [1], [0, 0, 1, 1], [], []>} : vector<8x128xbf16>, vector<128x512xbf16>, vector<8x512xf32> -> vector<8x512xf32>
    %295 = vector.extract_strided_slice %294 {offsets = [0, 0], sizes = [8, 256], strides = [1, 1]} : vector<8x512xf32> to vector<8x256xf32>
    %296 = vector.extract_strided_slice %294 {offsets = [0, 256], sizes = [8, 256], strides = [1, 1]} : vector<8x512xf32> to vector<8x256xf32>
    %297 = arith.negf %295 : vector<8x256xf32>
    %298 = math.exp %297 : vector<8x256xf32>
    %cst_130 = arith.constant 1.000000e+00 : f32
    %299 = vector.broadcast %cst_130 : f32 to vector<8x256xf32>
    %300 = arith.addf %299, %298 : vector<8x256xf32>
    %301 = arith.divf %299, %300 : vector<8x256xf32>
    %302 = arith.mulf %295, %301 : vector<8x256xf32>
    %303 = arith.mulf %302, %296 : vector<8x256xf32>
    %304 = arith.truncf %303 : vector<8x256xf32> to vector<8x256xbf16>
    %c1_131 = arith.constant 1 : index
    %c0_132 = arith.constant 0 : index
    %c0_133 = arith.constant 0 : index
    %305 = vector.load %arg18[%c1_131, %c0_132, %c0_133] : memref<2x256x128xbf16, #tpu.memory_space<vmem>>, vector<1x256x128xbf16>
    %306 = vector.shape_cast %305 : vector<1x256x128xbf16> to vector<256x128xbf16>
    %cst_134 = arith.constant dense<0.000000e+00> : vector<8x128xf32>
    %307 = tpu.matmul %304, %306, %cst_134 {dimension_numbers = #tpu.dot_dimension_numbers<[1], [0], [0], [1], [0, 0, 1, 1], [], []>} : vector<8x256xbf16>, vector<256x128xbf16>, vector<8x128xf32> -> vector<8x128xf32>
    %308 = arith.addf %276, %307 : vector<8x128xf32>
    %c0_135 = arith.constant 0 : index
    %c0_136 = arith.constant 0 : index
    %309 = vector.load %arg19[%c0_135, %c0_136] : memref<1x128xf32, #tpu.memory_space<vmem>>, vector<1x128xf32>
    %310 = arith.mulf %308, %308 : vector<8x128xf32>
    %cst_137 = arith.constant dense<0.000000e+00> : vector<8xf32>
    %311 = vector.multi_reduction <add>, %310, %cst_137 [1] : vector<8x128xf32> to vector<8xf32>
    %312 = vector.shape_cast %311 : vector<8xf32> to vector<8x1xf32>
    %cst_138 = arith.constant 1.280000e+02 : f32
    %313 = vector.broadcast %cst_138 : f32 to vector<8x1xf32>
    %314 = arith.divf %312, %313 : vector<8x1xf32>
    %cst_139 = arith.constant 9.99999997E-7 : f32
    %315 = vector.broadcast %cst_139 : f32 to vector<8x1xf32>
    %316 = arith.addf %314, %315 : vector<8x1xf32>
    %317 = math.rsqrt %316 : vector<8x1xf32>
    %318 = vector.broadcast %317 : vector<8x1xf32> to vector<8x128xf32>
    %319 = arith.mulf %308, %318 : vector<8x128xf32>
    %320 = vector.broadcast %309 : vector<1x128xf32> to vector<8x128xf32>
    %321 = arith.mulf %319, %320 : vector<8x128xf32>
    %322 = arith.truncf %321 : vector<8x128xf32> to vector<8x128xbf16>
    %c0_140 = arith.constant 0 : index
    %c0_141 = arith.constant 0 : index
    %323 = vector.load %arg20[%c0_140, %c0_141] : memref<128x128xbf16, #tpu.memory_space<vmem>>, vector<128x128xbf16>
    %cst_142 = arith.constant dense<0.000000e+00> : vector<8x128xf32>
    %324 = tpu.matmul %322, %323, %cst_142 {dimension_numbers = #tpu.dot_dimension_numbers<[1], [0], [0], [1], [0, 0, 1, 1], [], []>} : vector<8x128xbf16>, vector<128x128xbf16>, vector<8x128xf32> -> vector<8x128xf32>
    %c0_143 = arith.constant 0 : index
    %c0_144 = arith.constant 0 : index
    %c0_145 = arith.constant 0 : index
    %325 = vector.load %arg21[%c0_143, %c0_144, %c0_145] : memref<1x8x128xf32, #tpu.memory_space<vmem>>, vector<1x8x128xf32>
    %326 = vector.shape_cast %325 : vector<1x8x128xf32> to vector<8x128xf32>
    %327 = vector.shape_cast %324 : vector<8x128xf32> to vector<1x8x128xf32>
    tpu.vector_store %arg21[%c0_143, %c0_144, %c0_145], %327 {strides = array<i32>} : memref<1x8x128xf32, #tpu.memory_space<vmem>>, vector<1x8x128xf32>,
    return
  }
  func.func @transform_0(%arg0: i32) -> (i32, i32, i32) {
    %c0_i32 = arith.constant 0 : i32
    %c0_i32_0 = arith.constant 0 : i32
    %c0_i32_1 = arith.constant 0 : i32
    return %arg0, %c0_i32, %c0_i32_0 : i32, i32, i32
  }
  func.func @transform_1(%arg0: i32) -> (i32, i32) {
    %c0_i32 = arith.constant 0 : i32
    %c0_i32_0 = arith.constant 0 : i32
    %c0_i32_1 = arith.constant 0 : i32
    return %c0_i32, %c0_i32_0 : i32, i32
  }
  func.func @transform_2(%arg0: i32) -> (i32, i32) {
    %c0_i32 = arith.constant 0 : i32
    %c0_i32_0 = arith.constant 0 : i32
    %c0_i32_1 = arith.constant 0 : i32
    return %c0_i32, %c0_i32_0 : i32, i32
  }
  func.func @transform_3(%arg0: i32) -> (i32, i32) {
    %c0_i32 = arith.constant 0 : i32
    %c0_i32_0 = arith.constant 0 : i32
    %c0_i32_1 = arith.constant 0 : i32
    return %c0_i32, %c0_i32_0 : i32, i32
  }
  func.func @transform_4(%arg0: i32) -> (i32, i32) {
    %c0_i32 = arith.constant 0 : i32
    %c0_i32_0 = arith.constant 0 : i32
    %c0_i32_1 = arith.constant 0 : i32
    return %c0_i32, %c0_i32_0 : i32, i32
  }
  func.func @transform_5(%arg0: i32) -> (i32, i32) {
    %c0_i32 = arith.constant 0 : i32
    %c0_i32_0 = arith.constant 0 : i32
    %c0_i32_1 = arith.constant 0 : i32
    return %c0_i32, %c0_i32_0 : i32, i32
  }
  func.func @transform_6(%arg0: i32) -> (i32, i32) {
    %c0_i32 = arith.constant 0 : i32
    %c0_i32_0 = arith.constant 0 : i32
    %c0_i32_1 = arith.constant 0 : i32
    return %c0_i32, %c0_i32_0 : i32, i32
  }
  func.func @transform_7(%arg0: i32) -> (i32, i32) {
    %c0_i32 = arith.constant 0 : i32
    %c0_i32_0 = arith.constant 0 : i32
    %c0_i32_1 = arith.constant 0 : i32
    return %c0_i32, %c0_i32_0 : i32, i32
  }
  func.func @transform_8(%arg0: i32) -> (i32, i32) {
    %c0_i32 = arith.constant 0 : i32
    %c0_i32_0 = arith.constant 0 : i32
    %c0_i32_1 = arith.constant 0 : i32
    return %c0_i32, %c0_i32_0 : i32, i32
  }
  func.func @transform_9(%arg0: i32) -> (i32, i32) {
    %c0_i32 = arith.constant 0 : i32
    %c0_i32_0 = arith.constant 0 : i32
    %c0_i32_1 = arith.constant 0 : i32
    return %c0_i32, %c0_i32_0 : i32, i32
  }
  func.func @transform_10(%arg0: i32) -> (i32, i32, i32) {
    %c0_i32 = arith.constant 0 : i32
    %c0_i32_0 = arith.constant 0 : i32
    %c0_i32_1 = arith.constant 0 : i32
    %c0_i32_2 = arith.constant 0 : i32
    return %c0_i32, %c0_i32_0, %c0_i32_1 : i32, i32, i32
  }
  func.func @transform_11(%arg0: i32) -> (i32, i32, i32) {
    %c0_i32 = arith.constant 0 : i32
    %c0_i32_0 = arith.constant 0 : i32
    %c0_i32_1 = arith.constant 0 : i32
    %c0_i32_2 = arith.constant 0 : i32
    return %c0_i32, %c0_i32_0, %c0_i32_1 : i32, i32, i32
  }
  func.func @transform_12(%arg0: i32) -> (i32, i32, i32) {
    %c0_i32 = arith.constant 0 : i32
    %c0_i32_0 = arith.constant 0 : i32
    %c0_i32_1 = arith.constant 0 : i32
    %c0_i32_2 = arith.constant 0 : i32
    return %c0_i32, %c0_i32_0, %c0_i32_1 : i32, i32, i32
  }
  func.func @transform_13(%arg0: i32) -> (i32, i32, i32) {
    %c0_i32 = arith.constant 0 : i32
    %c0_i32_0 = arith.constant 0 : i32
    %c0_i32_1 = arith.constant 0 : i32
    %c0_i32_2 = arith.constant 0 : i32
    return %c0_i32, %c0_i32_0, %c0_i32_1 : i32, i32, i32
  }
  func.func @transform_14(%arg0: i32) -> (i32, i32, i32) {
    %c0_i32 = arith.constant 0 : i32
    %c0_i32_0 = arith.constant 0 : i32
    %c0_i32_1 = arith.constant 0 : i32
    %c0_i32_2 = arith.constant 0 : i32
    return %c0_i32, %c0_i32_0, %c0_i32_1 : i32, i32, i32
  }
  func.func @transform_15(%arg0: i32) -> (i32, i32, i32) {
    %c0_i32 = arith.constant 0 : i32
    %c0_i32_0 = arith.constant 0 : i32
    %c0_i32_1 = arith.constant 0 : i32
    %c0_i32_2 = arith.constant 0 : i32
    return %c0_i32, %c0_i32_0, %c0_i32_1 : i32, i32, i32
  }
  func.func @transform_16(%arg0: i32) -> (i32, i32, i32) {
    %c0_i32 = arith.constant 0 : i32
    %c0_i32_0 = arith.constant 0 : i32
    %c0_i32_1 = arith.constant 0 : i32
    %c0_i32_2 = arith.constant 0 : i32
    return %c0_i32, %c0_i32_0, %c0_i32_1 : i32, i32, i32
  }
  func.func @transform_17(%arg0: i32) -> (i32, i32, i32) {
    %c0_i32 = arith.constant 0 : i32
    %c0_i32_0 = arith.constant 0 : i32
    %c0_i32_1 = arith.constant 0 : i32
    %c0_i32_2 = arith.constant 0 : i32
    return %c0_i32, %c0_i32_0, %c0_i32_1 : i32, i32, i32
  }
  func.func @transform_18(%arg0: i32) -> (i32, i32) {
    %c0_i32 = arith.constant 0 : i32
    %c0_i32_0 = arith.constant 0 : i32
    %c0_i32_1 = arith.constant 0 : i32
    return %c0_i32, %c0_i32_0 : i32, i32
  }
  func.func @transform_19(%arg0: i32) -> (i32, i32) {
    %c0_i32 = arith.constant 0 : i32
    %c0_i32_0 = arith.constant 0 : i32
    %c0_i32_1 = arith.constant 0 : i32
    return %c0_i32, %c0_i32_0 : i32, i32
  }
  func.func @transform_20(%arg0: i32) -> (i32, i32, i32) {
    %c0_i32 = arith.constant 0 : i32
    %c0_i32_0 = arith.constant 0 : i32
    %c0_i32_1 = arith.constant 0 : i32
    return %arg0, %c0_i32, %c0_i32_0 : i32, i32, i32
  }
}

</mosaic_0001>

<bundles_post_ra>
// kernel: tile.73
= control target key start
LH: loop header
LB: loop body
LE: loop exit
PB: predicated region body
PF: predicated region fallthrough
CT: control target
= control target key end

     0   :  { %s22_s0 = inlined_call_operand.vmem [shape: f32[32], index: 0, kind: input, shape index: {}]   ;;  %s23_s1 = inlined_call_operand.vmem [shape: f32[2,32], index: 1, kind: output, shape index: {}]  }
   0x1   :  { %v4_v0 = vld [vmem:[%s22_s0] ss:$0 sm:$0xff] }
   0x2   :  { %5 = vst [vmem:[%s23_s1] sm:$0x3] %v4_v0 }

// kernel: tile.74
= control target key start
LH: loop header
LB: loop body
LE: loop exit
PB: predicated region body
PF: predicated region fallthrough
CT: control target
= control target key end

     0   :  { %vm7_vm0 = vcmask 261120   ;;  %vm13_vm1 = vcmask 523520   ;;  %s39_s0 = inlined_call_operand.vmem [shape: f32[2,32], index: 0, kind: input, shape index: {}]   ;;  %s40_s1 = inlined_call_operand.vmem [shape: f32[64], index: 1, kind: output, shape index: {}]  }
   0x1   :  { %v4_v0 = vld [vmem:[%s39_s0] sm:$0x3]  ;;  %s22_s0 = smov 32  }
   0x2   :  { %5 = vst [vmem:[#allocation1] sm:$0x3] %v4_v0 }
   0x9   :  { %v10_v1 = vld [vmem:[#allocation1 + $0x1] sm:$0x1]   ;;  %v6_v2 = vld [vmem:[#allocation1] sm:$0x1]  }
   0xa   :  { %11 = vrot.lane.b32.xlu0 %v10_v1, %s22_s0  ;;  %8 = vst.msk [vmem:[#allocation0] sm:$0x1] %vm7_vm0, %v6_v2  }
  0x7c   :  { %v12_v3 = vpop.permute.xlu0 %11  }
  0x7d   :  { %14 = vst.msk [vmem:[#allocation0] sm:$0x1] %vm13_vm1, %v12_v3  }
  0x84   :  { %v18_v4 = vld [vmem:[#allocation0] sm:$0x1] }
  0x85   :  { %20 = vst [vmem:[%s40_s1] sm:$0x1] %v18_v4 }

// kernel: tile.63
= control target key start
LH: loop header
LB: loop body
LE: loop exit
PB: predicated region body
PF: predicated region fallthrough
CT: control target
= control target key end

     0   :  { %s22_s0 = inlined_call_operand.vmem [shape: f32[32], index: 0, kind: input, shape index: {}]   ;;  %s23_s1 = inlined_call_operand.vmem [shape: f32[4,32], index: 1, kind: output, shape index: {}]  }
   0x1   :  { %v4_v0 = vld [vmem:[%s22_s0] ss:$0 sm:$0xff] }
   0x2   :  { %5 = vst [vmem:[%s23_s1] sm:$0xf] %v4_v0 }

// kernel: tile.68
= control target key start
LH: loop header
LB: loop body
LE: loop exit
PB: predicated region body
PF: predicated region fallthrough
CT: control target
= control target key end

     0   :  { %vm7_vm0 = vcmask 261120   ;;  %s37_s8 = smov 32   ;;  %s38_s9 = smov 64   ;;  %vm13_vm1 = vcmask 1048320   ;;  %vm19_vm2 = vcmask 785920   ;;  %vm25_vm3 = vcmask 523520   ;;  %s55_s0 = inlined_call_operand.vmem [shape: f32[4,32], index: 0, kind: input, shape index: {}]   ;;  %s56_s1 = inlined_call_operand.vmem [shape: f32[1,128], index: 1, kind: output, shape index: {}]  }
   0x1   :  { %v4_v0 = vld [vmem:[%s55_s0] sm:$0xf]  ;;  %s36_s0 = smov 96  }
   0x2   :  { %5 = vst [vmem:[#allocation1] sm:$0xf] %v4_v0 }
   0x9   :  { %v10_v1 = vld [vmem:[#allocation1 + $0x3] sm:$0x1]   ;;  %v22_v2 = vld [vmem:[#allocation1 + $0x1] sm:$0x1]   ;;  %v6_v3 = vld [vmem:[#allocation1] sm:$0x1]  }
   0xa   :  { %11 = vrot.lane.b32.xlu0 %v10_v1, %s36_s0  ;;  %23 = vrot.lane.b32.xlu1 %v22_v2, %s37_s8  ;;  %v16_v4 = vld [vmem:[#allocation1 + $0x2] sm:$0x1]   ;;  %8 = vst.msk [vmem:[#allocation0] sm:$0x1] %vm7_vm0, %v6_v3  }
   0xe   :  { %17 = vrot.lane.b32.xlu0 %v16_v4, %s38_s9 }
  0x7c   :  { %v12_v5 = vpop.permute.xlu0 %11   ;;  %v24_v6 = vpop.permute.xlu1 %23  }
  0x7d   :  { %14 = vst.msk [vmem:[#allocation0] sm:$0x1] %vm13_vm1, %v12_v5  }
  0x80   :  { %v18_v7 = vpop.permute.xlu0 %17  }
  0x81   :  { %20 = vst.msk [vmem:[#allocation0] sm:$0x1] %vm19_vm2, %v18_v7  }
  0x82   :  { %26 = vst.msk [vmem:[#allocation0] sm:$0x1] %vm25_vm3, %v24_v6  }
  0x89   :  { %v30_v8 = vld [vmem:[#allocation0] sm:$0x1] }
  0x8a   :  { %32 = vst [vmem:[%s56_s1] sm:$0x1] %v30_v8 }

// kernel: tile.59
= control target key start
LH: loop header
LB: loop body
LE: loop exit
PB: predicated region body
PF: predicated region fallthrough
CT: control target
= control target key end

     0   :  { %vm42_vm0 = vcmask 1047556   ;;  %vm44_vm1 = vcmask 261120   ;;  %vm54_vm2 = vcmask 523520   ;;  %s111_s0 = inlined_call_operand.vmem [shape: f32[8,2,32], index: 0, kind: input, shape index: {}]   ;;  %s112_s1 = inlined_call_operand.vmem [shape: f32[8,64], index: 1, kind: output, shape index: {}]  }
   0x1   :  { %v62_v0 = vld [vmem:[%s111_s0 + $0xe] sm:$0x3]  ;;  %v63_v1 = vld [vmem:[%s111_s0 + $0xc] sm:$0x3]  ;;  %v64_v2 = vld [vmem:[%s111_s0 + $0xa] sm:$0x3] }
   0x2   :  { %8 = vst [vmem:[#allocation0 + $0x38] sm:$0x3] %v62_v0  ;;  %13 = vst [vmem:[#allocation0 + $0x30] sm:$0x3] %v63_v1  ;;  %v65_v3 = vld [vmem:[%s111_s0 + $0x8] sm:$0x3] }
   0x3   :  { %18 = vst [vmem:[#allocation0 + $0x28] sm:$0x3] %v64_v2  ;;  %v66_v4 = vld [vmem:[%s111_s0 + $0x6] sm:$0x3]  ;;  %v67_v5 = vld [vmem:[%s111_s0 + $0x4] sm:$0x3] }
   0x4   :  { %23 = vst [vmem:[#allocation0 + $0x20] sm:$0x3] %v65_v3  ;;  %28 = vst [vmem:[#allocation0 + $0x18] sm:$0x3] %v66_v4  ;;  %v68_v6 = vld [vmem:[%s111_s0 + $0x2] sm:$0x3] }
   0x5   :  { %33 = vst [vmem:[#allocation0 + $0x10] sm:$0x3] %v67_v5  ;;  %v38_v7 = vld [vmem:[%s111_s0] sm:$0x3]  ;;  %37 = vst [vmem:[#allocation0 + $0x8] sm:$0x3] %v68_v6 }
   0x6   :  { %39 = vst [vmem:[#allocation0] sm:$0x3] %v38_v7  ;;  %s70_s0 = smov 32  }
   0xb   :  { %v41_v8 = vld [vmem:[#allocation0] ss:$8 sm:$0xf0]   ;;  %v49_v9 = vld [vmem:[#allocation0 + $0x1] ss:$8 sm:$0xf0]  }
   0xd   :  { %v40_v10 = vld [vmem:[#allocation0] ss:$8 sm:$0xf]   ;;  %v47_v11 = vld [vmem:[#allocation0 + $0x1] ss:$8 sm:$0xf]  }
   0xe   :  { %v43_v12 = vsel %vm42_vm0, %v41_v8, %v40_v10  ;;  %v51_v13 = vsel %vm42_vm0, %v49_v9, %v47_v11 }
   0xf   :  { %52 = vrot.lane.b32.xlu0 %v51_v13, %s70_s0  ;;  %45 = vst.msk [vmem:[%s112_s1] sm:$0xff] %vm44_vm1, %v43_v12  }
  0x81   :  { %v53_v14 = vpop.permute.xlu0 %52  }
  0x82   :  { %55 = vst.msk [vmem:[%s112_s1] sm:$0xff] %vm54_vm2, %v53_v14  }

// kernel: tile.44
= control target key start
LH: loop header
LB: loop body
LE: loop exit
PB: predicated region body
PF: predicated region fallthrough
CT: control target
= control target key end

     0   :  { %vm42_vm0 = vcmask 1047556   ;;  %vm44_vm1 = vcmask 261120   ;;  %s93_s22 = smov 32   ;;  %s94_s25 = smov 64   ;;  %vm54_vm2 = vcmask 1048320   ;;  %vm64_vm3 = vcmask 785920   ;;  %s146_s0 = inlined_call_operand.vmem [shape: f32[8,4,32], index: 0, kind: input, shape index: {}]   ;;  %s147_s1 = inlined_call_operand.vmem [shape: f32[8,128], index: 1, kind: output, shape index: {}]  }
   0x1   :  { %v82_v0 = vld [vmem:[%s146_s0 + $0x1c] sm:$0xf]  ;;  %v83_v1 = vld [vmem:[%s146_s0 + $0x18] sm:$0xf]  ;;  %v84_v2 = vld [vmem:[%s146_s0 + $0x14] sm:$0xf] }
   0x2   :  { %8 = vst [vmem:[#allocation0 + $0x38] sm:$0xf] %v82_v0  ;;  %13 = vst [vmem:[#allocation0 + $0x30] sm:$0xf] %v83_v1  ;;  %v85_v3 = vld [vmem:[%s146_s0 + $0x10] sm:$0xf] }
   0x3   :  { %18 = vst [vmem:[#allocation0 + $0x28] sm:$0xf] %v84_v2  ;;  %v86_v4 = vld [vmem:[%s146_s0 + $0xc] sm:$0xf]  ;;  %v87_v5 = vld [vmem:[%s146_s0 + $0x8] sm:$0xf] }
   0x4   :  { %23 = vst [vmem:[#allocation0 + $0x20] sm:$0xf] %v85_v3  ;;  %28 = vst [vmem:[#allocation0 + $0x18] sm:$0xf] %v86_v4  ;;  %v88_v6 = vld [vmem:[%s146_s0 + $0x4] sm:$0xf] }
   0x5   :  { %33 = vst [vmem:[#allocation0 + $0x10] sm:$0xf] %v87_v5  ;;  %v38_v7 = vld [vmem:[%s146_s0] sm:$0xf]  ;;  %37 = vst [vmem:[#allocation0 + $0x8] sm:$0xf] %v88_v6 }
   0x6   :  { %39 = vst [vmem:[#allocation0] sm:$0xf] %v38_v7  ;;  %s92_s0 = smov 96   ;;  %vm74_vm4 = vcmask 523520  }
   0xb   :  { %v49_v8 = vld [vmem:[#allocation0 + $0x3] ss:$8 sm:$0xf0]   ;;  %v59_v9 = vld [vmem:[#allocation0 + $0x2] ss:$8 sm:$0xf0]  }
   0xc   :  { %v69_v14 = vld [vmem:[#allocation0 + $0x1] ss:$8 sm:$0xf0]   ;;  %v41_v17 = vld [vmem:[#allocation0] ss:$8 sm:$0xf0]  }
   0xd   :  { %v47_v10 = vld [vmem:[#allocation0 + $0x3] ss:$8 sm:$0xf]   ;;  %v57_v11 = vld [vmem:[#allocation0 + $0x2] ss:$8 sm:$0xf]  }
   0xe   :  { %v51_v12 = vsel %vm42_vm0, %v49_v8, %v47_v10  ;;  %v67_v13 = vld [vmem:[#allocation0 + $0x1] ss:$8 sm:$0xf]   ;;  %v40_v16 = vld [vmem:[#allocation0] ss:$8 sm:$0xf]   ;;  %v61_v18 = vsel %vm42_vm0, %v59_v9, %v57_v11 }
   0xf   :  { %52 = vrot.lane.b32.xlu0 %v51_v12, %s92_s0  ;;  %v71_v15 = vsel %vm42_vm0, %v69_v14, %v67_v13  ;;  %v43_v19 = vsel %vm42_vm0, %v41_v17, %v40_v16 }
  0x10   :  { %72 = vrot.lane.b32.xlu1 %v71_v15, %s93_s22  ;;  %45 = vst.msk [vmem:[%s147_s1] sm:$0xff] %vm44_vm1, %v43_v19  }
  0x13   :  { %62 = vrot.lane.b32.xlu0 %v61_v18, %s94_s25 }
  0x81   :  { %v53_v20 = vpop.permute.xlu0 %52  }
  0x82   :  { %55 = vst.msk [vmem:[%s147_s1] sm:$0xff] %vm54_vm2, %v53_v20   ;;  %v73_v21 = vpop.permute.xlu1 %72  }
  0x85   :  { %v63_v22 = vpop.permute.xlu0 %62  }
  0x86   :  { %65 = vst.msk [vmem:[%s147_s1] sm:$0xff] %vm64_vm3, %v63_v22  }
  0x87   :  { %75 = vst.msk [vmem:[%s147_s1] sm:$0xff] %vm74_vm4, %v73_v21  }

// kernel: run.1
= control target key start
LH: loop header
LB: loop body
LE: loop exit
PB: predicated region body
PF: predicated region fallthrough
CT: control target
= control target key end

     0   :  { %s5858_s0 = inlined_call_operand.vmem [shape: f32[2,8,128], index: 0, kind: input, shape index: {}]   ;;  %s5859_s1 = inlined_call_operand.vmem [shape: f32[8,128], index: 1, kind: input, shape index: {}]   ;;  %s5860_s2 = inlined_call_operand.vmem [shape: f32[8,128], index: 2, kind: input, shape index: {}]   ;;  %s5861_s3 = inlined_call_operand.vmem [shape: f32[8,128], index: 3, kind: input, shape index: {}]   ;;  %s5862_s4 = inlined_call_operand.vmem [shape: f32[8,128], index: 4, kind: input, shape index: {}]   ;;  %s5863_s5 = inlined_call_operand.vmem [shape: f32[8,128], index: 5, kind: input, shape index: {}]   ;;  %s5864_s6 = inlined_call_operand.vmem [shape: f32[8,128], index: 6, kind: input, shape index: {}]   ;;  %s5865_s7 = inlined_call_operand.vmem [shape: f32[128,128], index: 7, kind: input, shape index: {}]   ;;  %s5866_s8 = inlined_call_operand.vmem [shape: f32[128,128], index: 8, kind: input, shape index: {}]   ;;  %s5867_s9 = inlined_call_operand.vmem [shape: f32[1,128], index: 9, kind: input, shape index: {}]   ;;  %s5868_s10 = inlined_call_operand.vmem [shape: f32[2,1,128], index: 10, kind: input, shape index: {}]   ;;  %s5869_s11 = inlined_call_operand.vmem [shape: f32[2,1,128], index: 11, kind: input, shape index: {}]   ;;  %s5870_s12 = inlined_call_operand.vmem [shape: f32[2,1,128], index: 12, kind: input, shape index: {}]   ;;  %s5871_s13 = inlined_call_operand.vmem [shape: f32[2,1,128], index: 13, kind: input, shape index: {}]   ;;  %s5872_s14 = inlined_call_operand.vmem [shape: bf16[2,128,256], index: 14, kind: input, shape index: {}]   ;;  %s5873_s15 = inlined_call_operand.vmem [shape: bf16[2,128,128], index: 15, kind: input, shape index: {}]   ;;  %s5874_s16 = inlined_call_operand.vmem [shape: bf16[2,128,512], index: 16, kind: input, shape index: {}]   ;;  %s5875_s17 = inlined_call_operand.vmem [shape: bf16[2,256,128], index: 17, kind: input, shape index: {}]   ;;  %s5876_s18 = inlined_call_operand.vmem [shape: f32[1,128], index: 18, kind: input, shape index: {}]   ;;  %s5877_s19 = inlined_call_operand.vmem [shape: bf16[128,128], index: 19, kind: input, shape index: {}]   ;;  %s5878_s20 = inlined_call_operand.hbm [shape: f32[2,8,128], index: 20, kind: output, shape index: {}]  }
   0x1   :  { %5894 = sst [smem:[#allocation12_spill]] %s5858_s0 }
   0x2   :  { %5895 = sst [smem:[#allocation13_spill]] %s5859_s1 }
   0x3   :  { %5896 = sst [smem:[#allocation14_spill]] %s5860_s2 }
   0x4   :  { %5897 = sst [smem:[#allocation15_spill]] %s5861_s3 }
   0x5   :  { %5898 = sst [smem:[#allocation16_spill]] %s5862_s4 }
   0x6   :  { %5899 = sst [smem:[#allocation17_spill]] %s5878_s20 }
   0x7   :  { %25 = vsyncpa [#allocation3], 0 }
   0x8   :  { %27 = vsyncpa [#allocation3 + $0x1], 0  ;;  %s4847_s1 = smov 0   ;;  %s4849_s22 = smov 0  }
   0x9   :  { %s4851_s23 = smov 0   ;;  %s4853_s24 = smov 0  }
   0xa LB: > { %5900 = sst [smem:[#allocation5_spill]] %s4718_s1  ;;  %s4868_s2 = sadd.s32 4294967295, %s4730_s24   ;;  %s4730_s24 = sphi %s4853_s24, %s5926_s24   ;;  %s4726_s23 = sphi %s4851_s23, %s5928_s23   ;;  %s4722_s22 = sphi %s4849_s22, %s5930_s22   ;;  %s4718_s1 = sphi %s4847_s1, %s5929_s1  }
   0xb   : > { %5901 = sst [smem:[#allocation6_spill]] %s4726_s23  ;;  %s3558_s25 = sadd.s32 4294967294, %s4730_s24  }
   0xc   : > { %5902 = sst [smem:[#allocation7_spill]] %s4730_s24  ;;  %s4872_s3 = sadd.s32 1, %s4730_s24  }
   0xd   : > { %5903 = sst [smem:[#allocation8_spill]] %s4872_s3  ;;  %s465_s26 = sadd.s32 1, %s4726_s23 }
   0xe   : > { %s462_s27 = ssub.s32 %s4730_s24, %s4872_s3  ;;  %p475_p0 = scmp.ne.s32.totalorder %s4726_s23, %s4722_s22 }
   0xf   : > { %p463_p1 = scmp.eq.s32.totalorder %s462_s27, 0  ;;  %p476_p2 = scmp.eq.s32.totalorder %s4868_s2, 1 }
  0x10   : > { %p481_p3 = scmp.ne.s32.totalorder %s4722_s22, %s4718_s1  ;;  %p482_p4 = scmp.eq.s32.totalorder %s3558_s25, 1 }
  0x11   : > { %s4883_s28 = scalar_select %p463_p1, %s4726_s23, %s465_s26  }
  0x12   : > { %p4885_p5 = por %p476_p2, %p475_p0  ;;  %p4889_p6 = por %p482_p4, %p481_p3 }
  0x13   : > { %5904 = sst [smem:[#allocation9_spill]] %s4883_s28  ;;  %p3561_p7 = scmp.ge.s32.totalorder %s4730_s24, 1 }
  0x14   : > { %s5905_s4 = scalar_select %p4885_p5, 1, 0 }
  0x15   : > { %s5907_s29 = scalar_select %p4889_p6, 1, 0 }
  0x16   : > { %5906 = sst [smem:[#allocation10_spill]] %s5905_s4  ;;  %p564_p8 = scmp.lt.s32.totalorder %s4730_s24, 3 }
  0x17   : > { %5908 = sst [smem:[#allocation11_spill]] %s5907_s29 }
  0x18   : > { %p565_p9 = pnand %p3561_p7, %p564_p8 }
  0x19   : > { %p621_p10 = scmp.lt.s32.totalorder (!%p565_p9), %s4868_s2, 1  ;;  %v4401_v0 = vld [vmem:[%s5872_s14 + $0x4] ss:$8 sps:$4 sm:$0xff] (!%p565_p9)   ;;  %v4403_v1 = vld [vmem:[%s5872_s14] ss:$8 sps:$4 sm:$0xff] (!%p565_p9)   ;;  %s5909_s25 = sld [smem:[#allocation12_spill]] (!%p565_p9) }
  0x1a   : > { %568 = sbr.rel (%p565_p9) target bundleno = 6610 (0x19d2), region = 100  ;;  %777 = vmatprep.subr.bf16.mxu0 (!%p565_p9), %v4401_v0  ;;  %v4404_v2 = vld [vmem:[%s5872_s14 + $0x14] ss:$8 sps:$4 sm:$0xff] (!%p565_p9)   ;;  %v4406_v3 = vld [vmem:[%s5872_s14 + $0x10] ss:$8 sps:$4 sm:$0xff] (!%p565_p9)   ;;  %v4732_v15 = vmov (!%p565_p9), 0  }
  0x1b   : > { %778 = vmatpush1.bf16.msra.mxu0 (!%p565_p9), %v4403_v1  ;;  %v4407_v4 = vld [vmem:[%s5872_s14 + $0x24] ss:$8 sps:$4 sm:$0xff] (!%p565_p9)   ;;  %v4409_v5 = vld [vmem:[%s5872_s14 + $0x20] ss:$8 sps:$4 sm:$0xff] (!%p565_p9)   ;;  %v4410_v8 = vld [vmem:[%s5872_s14 + $0x34] ss:$8 sps:$4 sm:$0xff] (!%p565_p9)   ;;  %809 = vmatprep.mubr.bf16.mxu0 (!%p565_p9), %v4732_v15 }
  0x1c   : > { %779 = vmatprep.subr.bf16.mxu0 (!%p565_p9), %v4404_v2  ;;  %v4412_v9 = vld [vmem:[%s5872_s14 + $0x30] ss:$8 sps:$4 sm:$0xff] (!%p565_p9)   ;;  %v4413_v10 = vld [vmem:[%s5872_s14 + $0x44] ss:$8 sps:$4 sm:$0xff] (!%p565_p9)   ;;  %v4415_v11 = vld [vmem:[%s5872_s14 + $0x40] ss:$8 sps:$4 sm:$0xff] (!%p565_p9)  }
  0x1d   : > { %v4416_v12 = vld [vmem:[%s5872_s14 + $0x54] ss:$8 sps:$4 sm:$0xff] (!%p565_p9)   ;;  %v4418_v13 = vld [vmem:[%s5872_s14 + $0x50] ss:$8 sps:$4 sm:$0xff] (!%p565_p9)   ;;  %v4419_v14 = vld [vmem:[%s5872_s14 + $0x64] ss:$8 sps:$4 sm:$0xff] (!%p565_p9)  }
  0x1e   : > { %v4421_v16 = vld [vmem:[%s5872_s14 + $0x60] ss:$8 sps:$4 sm:$0xff] (!%p565_p9)   ;;  %v4422_v17 = vld [vmem:[%s5872_s14 + $0x74] ss:$8 sps:$4 sm:$0xff] (!%p565_p9)   ;;  %v4424_v18 = vld [vmem:[%s5872_s14 + $0x70] ss:$8 sps:$4 sm:$0xff] (!%p565_p9)  }
  0x1f   : > { %780 = vmatpush1.bf16.msra.mxu0 (!%p565_p9), %v4406_v3  ;;  %v819_v19 = vld [vmem:[%s5865_s7] sm:$0xff] (!%p565_p9)  ;;  %v820_v20 = vld [vmem:[%s5865_s7 + $0x8] sm:$0xff] (!%p565_p9)  ;;  %v4733_v21 = vmov (!%p565_p9), 0.0|0.0   ;;  %v821_v23 = vld [vmem:[%s5865_s7 + $0x10] sm:$0xff] (!%p565_p9)  ;;  %vm4734_vm0 = vmmov (!%p565_p9), 0   ;;  %s4736_s23 = smov (!%p565_p9), 16  }
  0x20   : > { %781 = vmatprep.subr.bf16.mxu0 (!%p565_p9), %v4407_v4  ;;  %4257 = vmatprep.subr.bf16.mxu1 (!%p565_p9), %v4733_v21  ;;  %v4963_v22 = vpack.c.bf16 (!%p565_p9), %v820_v20, %v819_v19  ;;  %v822_v24 = vld [vmem:[%s5865_s7 + $0x18] sm:$0xff] (!%p565_p9)  ;;  %v823_v26 = vld [vmem:[%s5865_s7 + $0x20] sm:$0xff] (!%p565_p9)  ;;  %v824_v27 = vld [vmem:[%s5865_s7 + $0x28] sm:$0xff] (!%p565_p9)  ;;  %s4737_s3 = smov (!%p565_p9), 112   ;;  %s5910_s4 = sld [smem:[#allocation13_spill]] (!%p565_p9)  ;;  %vm1041_vm1 = vcmask (!%p565_p9), 261120  }
  0x21   : > { %s622_s26 = scalar_select %p621_p10, %s4868_s2, 1  ;;  %v4973_v25 = vpack.c.bf16 %v822_v24, %v821_v23  ;;  %v4983_v28 = vpack.c.bf16 %v824_v27, %v823_v26  ;;  %v825_v29 = vld [vmem:[%s5865_s7 + $0x30] sm:$0xff]  ;;  %v826_v30 = vld [vmem:[%s5865_s7 + $0x38] sm:$0xff]  ;;  %v827_v32 = vld [vmem:[%s5865_s7 + $0x40] sm:$0xff]  ;;  %vm1128_vm3 = vcmask 64512   ;;  %vm1445_vm5 = vcmask 523264  }
  0x22   : > { %4259 = vmatpush3.bf16.msra.mxu1 %v4963_v22  ;;  %v4993_v31 = vpack.c.bf16 %v826_v30, %v825_v29  ;;  %v828_v33 = vld [vmem:[%s5865_s7 + $0x48] sm:$0xff]  ;;  %v829_v35 = vld [vmem:[%s5865_s7 + $0x50] sm:$0xff]  ;;  %v830_v36 = vld [vmem:[%s5865_s7 + $0x58] sm:$0xff]  ;;  %s5911_s27 = sld [smem:[#allocation14_spill]]  ;;  %s5912_s21 = sld [smem:[#allocation15_spill]]  ;;  %vm1447_vm6 = vcmask 785408  }
  0x23   : > { %s3563_s30 = sshll.u32 %s622_s26, 3  ;;  %782 = vmatpush1.bf16.msra.mxu0 %v4409_v5  ;;  %4260 = vmatprep.subr.bf16.mxu1 %v4733_v21  ;;  %v5003_v34 = vpack.c.bf16 %v828_v33, %v827_v32  ;;  %v5013_v37 = vpack.c.bf16 %v830_v36, %v829_v35  ;;  %v831_v38 = vld [vmem:[%s5865_s7 + $0x60] sm:$0xff]  ;;  %v832_v39 = vld [vmem:[%s5865_s7 + $0x68] sm:$0xff]  ;;  %v918_v52 = vld [vmem:[%s5866_s8 + $0x10] sm:$0xff]  ;;  %s5888_s0 = smov 32  }
  0x24   : > { %s4915_s24 = scalar_lea.vmem %s5909_s25, %s3563_s30  ;;  %783 = vmatprep.subr.bf16.mxu0 %v4410_v8  ;;  %v5023_v40 = vpack.c.bf16 %v832_v39, %v831_v38  ;;  %v3564_v45 = vld [vmem:[%s5868_s10] ss:$0 sm:$0xff]  ;;  %v917_v48 = vld [vmem:[%s5866_s8 + $0x8] sm:$0xff]  ;;  %v919_v53 = vld [vmem:[%s5866_s8 + $0x18] sm:$0xff]  ;;  %s5890_s30 = smov 64  }
  0x25   : > { %v4921_v6 = vld [vmem:[%s4915_s24] sm:$0xff]  ;;  %v5047_v54 = vpack.c.bf16 %v919_v53, %v918_v52  ;;  %v921_v56 = vld [vmem:[%s5866_s8 + $0x28] sm:$0xff]  ;;  %v922_v58 = vld [vmem:[%s5866_s8 + $0x30] sm:$0xff]  ;;  %s618_s1 = sand.u32 1, %s4722_s22  }
  0x26   : > { %v665_v7 = vmul.f32 %v4921_v6, %v4921_v6  ;;  %4262 = vmatpush3.bf16.msra.mxu1 %v4973_v25  ;;  %v916_v47 = vld [vmem:[%s5866_s8] sm:$0xff]  ;;  %v923_v59 = vld [vmem:[%s5866_s8 + $0x38] sm:$0xff]  ;;  %v925_v62 = vld [vmem:[%s5866_s8 + $0x48] sm:$0xff]  ;;  %s3562_s28 = sshll.u32 %s618_s1, 3  ;;  %s3486_s26 = scalar_lea.sflag [#allocation3], %s618_s1 }
  0x27   : > { %784 = vmatpush1.bf16.msra.mxu0 %v4412_v9  ;;  %4263 = vmatprep.subr.bf16.mxu1 %v4733_v21  ;;  %v5038_v50 = vpack.c.bf16 %v917_v48, %v916_v47  ;;  %v920_v55 = vld [vmem:[%s5866_s8 + $0x20] sm:$0xff]  ;;  %v5067_v60 = vpack.c.bf16 %v923_v59, %v922_v58  ;;  %v926_v0 = vld [vmem:[%s5866_s8 + $0x50] sm:$0xff]  ;;  %v927_v1 = vld [vmem:[%s5866_s8 + $0x58] sm:$0xff]  ;;  %s620_s20 = scalar_lea.vmem [#allocation2], %s3562_s28 }
  0x28   : > { %666 = vadd.xlane.f32.xlu0 %v665_v7  ;;  %785 = vmatprep.subr.bf16.mxu0 %v4413_v10  ;;  %v5057_v57 = vpack.c.bf16 %v921_v56, %v920_v55  ;;  %v924_v61 = vld [vmem:[%s5866_s8 + $0x40] sm:$0xff]  ;;  %v5087_v2 = vpack.c.bf16 %v927_v1, %v926_v0  ;;  %v929_v4 = vld [vmem:[%s5866_s8 + $0x68] sm:$0xff]  ;;  %v834_v7 = vld [vmem:[%s5865_s7 + $0x78] sm:$0xff] }
  0x29   : > { %v5077_v63 = vpack.c.bf16 %v925_v62, %v924_v61  ;;  %v928_v3 = vld [vmem:[%s5866_s8 + $0x60] sm:$0xff]  ;;  %v930_v9 = vld [vmem:[%s5866_s8 + $0x70] sm:$0xff]  ;;  %v931_v10 = vld [vmem:[%s5866_s8 + $0x78] sm:$0xff] }
  0x2a   : > { %4265 = vmatpush3.bf16.msra.mxu1 %v4983_v28  ;;  %v5097_v5 = vpack.c.bf16 %v929_v4, %v928_v3  ;;  %v3582_v30 = vld [vmem:[%s5871_s13] ss:$0 sm:$0xff] }
  0x2b   : > { %786 = vmatpush1.bf16.msra.mxu0 %v4415_v11  ;;  %4266 = vmatprep.subr.bf16.mxu1 %v4733_v21  ;;  %v5116_v11 = vpack.c.bf16 %v931_v10, %v930_v9  ;;  %v3581_v33 = vld [vmem:[%s5870_s12] ss:$0 sm:$0xff]  ;;  %v633_v9 = vlaneseq }
  0x2c   : > { %787 = vmatprep.subr.bf16.mxu0 %v4416_v12  ;;  %v4735_v12 = vmov 0.0   ;;  %v5134_v38 = vld [vmem:[%s5867_s9] ss:$0 sm:$0xff] }
  0x2d   : > { %4049 = vmatprep.mubr.msk.f32.mxu1 %vm4734_vm0, %v4735_v12  ;;  %v5161_v52 = vld [vmem:[%s5863_s5] sm:$0xff]  ;;  %v634_v10 = vshrl.u32 %v633_v9, 7 }
  0x2e   : > { %4268 = vmatpush3.bf16.msra.mxu1 %v4993_v31  ;;  %v5173_v62 = vld [vmem:[%s5864_s6] sm:$0xff] }
  0x2f   : > { %788 = vmatpush1.bf16.msra.mxu0 %v4418_v13  ;;  %4269 = vmatprep.subr.bf16.mxu1 %v4733_v21 }
  0x30   : > { %789 = vmatprep.subr.bf16.mxu0 %v4419_v14 }
  0x32   : > { %4271 = vmatpush3.bf16.msra.mxu1 %v5003_v34 }
  0x33   : > { %790 = vmatpush1.bf16.msra.mxu0 %v4421_v16  ;;  %4272 = vmatprep.subr.bf16.mxu1 %v4733_v21 }
  0x34   : > { %791 = vmatprep.subr.bf16.mxu0 %v4422_v17 }
  0x36   : > { %4274 = vmatpush3.bf16.msra.mxu1 %v5013_v37 }
  0x37   : > { %792 = vmatpush1.bf16.msra.mxu0 %v4424_v18  ;;  %4275 = vmatprep.subr.bf16.mxu1 %v4733_v21 }
  0x38   : > { %4281 = vmatprep.subr.bf16.mxu0 %v4733_v21 }
  0x3a   : > { %4277 = vmatpush3.bf16.msra.mxu1 %v5023_v40 }
  0x3b   : > { %4278 = vmatprep.subr.bf16.mxu1 %v4733_v21 }
  0xb5   : > { %v667_v41 = vpop.xlane.xlu0 %666 }
  0xb6   : > { %v669_v42 = vmul.f32 0.0078125, %v667_v41 }
  0xb8   : > { %v670_v43 = vadd.f32 1e-06, %v669_v42 }
  0xba   : > { %4601 = vrsqrt.f32 %v670_v43 }
  0xc4   : > { %v4602_v44 = vpop.eup %4601 }
  0xc5   : > { %v672_v46 = vmul.f32 %v4602_v44, %v4921_v6  ;;  %v833_v6 = vld [vmem:[%s5865_s7 + $0x70] sm:$0xff]  ;;  %v5144_v44 = vld [vmem:[%s5910_s4] sm:$0xff]  ;;  %s5913_s4 = sld [smem:[#allocation16_spill]] }
  0xc6   : > { %v5108_v8 = vpack.c.bf16 %v834_v7, %v833_v6 }
  0xc7   : > { %v679_v49 = vmul.f32 %v3564_v45, %v672_v46  ;;  %v5149_v45 = vld [vmem:[%s5911_s27] sm:$0xff]  ;;  %s5892_s27 = smov 96  }
  0xc8   : > { %4280 = vmatpush3.bf16.msra.mxu1 %v5108_v8  ;;  %v5154_v46 = vld [vmem:[%s5912_s21] sm:$0xff] }
  0xc9   : > { %v680_v51 = vpack.c.bf16 %v679_v49, %v679_v49 }
  0xcb   : > { %810 = vmatmul.mubr.bf16.vlgmr.msra.gmra.mrb[0].mxu0 %v680_v51  ;;  %v5167_v56 = vld [vmem:[%s5913_s4] sm:$0xff]  ;;  %s5922_s4 = sld [smem:[#allocation17_spill]] }
  0xcc   : > { %4283 = vmatpush3.bf16.msra.mxu0 %v5038_v50  ;;  %4084 = vmatprep.mubr.msk.f32.mxu0 %vm4734_vm0, %v4735_v12 }
  0xcd   : > { %4284 = vmatprep.subr.bf16.mxu0 %v4733_v21 }
  0xd0   : > { %4286 = vmatpush3.bf16.msra.mxu0 %v5047_v54 }
  0xd1   : > { %4287 = vmatprep.subr.bf16.mxu0 %v4733_v21 }
  0xd4   : > { %4289 = vmatpush3.bf16.msra.mxu0 %v5057_v57 }
  0xd5   : > { %4290 = vmatprep.subr.bf16.mxu0 %v4733_v21 }
  0xd8   : > { %4292 = vmatpush3.bf16.msra.mxu0 %v5067_v60 }
  0xd9   : > { %4293 = vmatprep.subr.bf16.mxu0 %v4733_v21 }
  0xdc   : > { %4295 = vmatpush3.bf16.msra.mxu0 %v5077_v63 }
  0xdd   : > { %4296 = vmatprep.subr.bf16.mxu0 %v4733_v21 }
  0xe0   : > { %4298 = vmatpush3.bf16.msra.mxu0 %v5087_v2 }
  0xe1   : > { %4299 = vmatprep.subr.bf16.mxu0 %v4733_v21 }
  0xe4   : > { %4301 = vmatpush3.bf16.msra.mxu0 %v5097_v5 }
  0xe5   : > { %4302 = vmatprep.subr.bf16.mxu0 %v4733_v21 }
  0xe8   : > { %4304 = vmatpush3.bf16.msra.mxu0 %v5116_v11 }
 0x19e   : > { %v811_v13 = vpop.f32.mrb[0].mxu0 }
 0x19f   : > { %v818_v14 = vmul.f32 %v811_v13, %v811_v13  ;;  %v813_v16 = vpop.f32.mrb[1].mxu0 }
 0x1a0   : > { %v915_v17 = vmul.f32 %v813_v16, %v813_v16  ;;  %v815_v18 = vpop.f32.mrb[2].mxu0 }
 0x1a1   : > { %v816_v19 = vpop.f32.mrb[3].mxu0  ;;  %4050 = vmatmul.mubr.f32.vlgmr.msra.gmra.mrb[0].mxu1 %v818_v14 }
 0x1a2   : > { %4085 = vmatmul.mubr.f32.vlgmr.msra.gmra.mrb[4].mxu0 %v915_v17  ;;  %v640_v17 = vand.u32 7, %v634_v10 }
 0x1a3   : > { %1795 = vmatprep.mubr.bf16.mxu0 %v4732_v15 }
 0x274   : > { %v901_v20 = vpop.f32.mrb[0].mxu1 }
 0x275   : > { %v902_v23 = vadd.f32 1e-06, %v901_v20  ;;  %v4051_v24 = vpop.f32.mrb[1].mxu1  ;;  %v998_v26 = vpop.f32.mrb[4].mxu0 }
 0x276   : > { %v999_v27 = vadd.f32 1e-06, %v998_v26  ;;  %v4086_v29 = vpop.f32.mrb[5].mxu0 }
 0x277   : > { %4603 = vrsqrt.f32 %v902_v23 }
 0x278   : > { %4605 = vrsqrt.f32 %v999_v27 }
 0x281   : > { %v4604_v32 = vpop.eup %4603 }
 0x282   : > { %v4606_v35 = vpop.eup %4605  ;;  %v906_v36 = vmul.f32 %v4604_v32, %v811_v13  ;;  %v635_v13 = vadd.s32 8, %v634_v10 }
 0x283   : > { %v1010_v39 = vmul.f32 %v4606_v35, %v3582_v30 }
 0x284   : > { %v914_v41 = vmul.f32 %v3581_v33, %v906_v36  ;;  %v647_v14 = vand.u32 7, %v635_v13 }
 0x285   : > { %v1018_v42 = vadd.f32 %v5134_v38, %v1010_v39 }
 0x286   : > { %1025 = vrot.lane.b32.xlu1 %v914_v41, %s4736_s23  ;;  %1021 = vrot.lane.b32.xlu0 %v914_v41, %s4737_s3  ;;  %v1020_v49 = vmul.f32 %v914_v41, %v5144_v44 }
 0x287   : > { %v1019_v43 = vmul.f32 %v1018_v42, %v813_v16  ;;  %v661_v16 = vand.u32 127, %v633_v9 }
 0x289   : > { %v1029_v0 = vmul.f32 %v1019_v43, %v5167_v56  ;;  %vm5186_vm2 = vcmp.gt.s32.totalorder %v661_v16, %v647_v14  ;;  %vm5190_vm4 = vcmp.gt.s32.totalorder %v661_v16, %v640_v17 }
 0x28a   : > { %1030 = vrot.lane.b32.xlu1 %v1019_v43, %s4737_s3 }
 0x28e   : > { %1034 = vrot.lane.b32.xlu1 %v1019_v43, %s4736_s23 }
 0x2f8   : > { %v1026_v47 = vpop.permute.xlu1 %1025  ;;  %v1022_v48 = vpop.permute.xlu0 %1021 }
 0x2f9   : > { %v1023_v51 = vmul.f32 %v1022_v48, %v5149_v45  ;;  %v1027_v53 = vmul.f32 %v1026_v47, %v5154_v46 }
 0x2fb   : > { %v1024_v55 = vadd.f32 %v1023_v51, %v1020_v49 }
 0x2fc   : > { %v1031_v58 = vpop.permute.xlu1 %1030 }
 0x2fd   : > { %v1028_v59 = vadd.f32 %v1027_v53, %v1024_v55  ;;  %v1032_v61 = vmul.f32 %v1031_v58, %v5161_v52 }
 0x2ff   : > { %4089 = vmatprep.mubr.msk.f32.mxu1 %vm1041_vm1, %v1028_v59  ;;  %1039 = vrot.lane.b32.xlu1 %v1028_v59, %s5892_s27  ;;  %v1033_v3 = vadd.f32 %v1032_v61, %v1029_v0 }
 0x300   : > { %v1035_v1 = vpop.permute.xlu1 %1034 }
 0x301   : > { %v1036_v4 = vmul.f32 %v1035_v1, %v5173_v62 }
 0x303   : > { %v5179_v6 = vadd.f32 %v1036_v4, %v1033_v3 }
 0x305   : > { %4087 = vmatprep.subr.msk.mxu1 %vm1041_vm1, %v5179_v6 }
 0x306   : > { %4088 = vmatpush3.xpose.msk.msra.mxu1 %vm1041_vm1, %v5179_v6 }
 0x371   : > { %v1040_v7 = vpop.permute.xlu1 %1039 }
 0x372   : > { %4090 = vmatmul.mubr.msk.f32.vlgmr.msra.gmra.mrb[2].mxu1 %vm1041_vm1, %v1040_v7 }
 0x445   : > { %v4091_v18 = vpop.f32.mrb[2].mxu1 }
 0x446   : > { %v1125_v20 = vmul.f32 0.17677669, %v4091_v18  ;;  %v1115_v23 = vpop.f32.mrb[3].mxu1 }
 0x447   : > { %v1124_v26 = vmul.f32 0.17677669, %v1115_v23 }
 0x448   : > { %v1127_v27 = vsel %vm5186_vm2, -1e+30, %v1125_v20 }
 0x449   : > { %v1132_v29 = vsel %vm1128_vm3, %v1127_v27, -inf  ;;  %v1126_v30 = vsel %vm5190_vm4, -1e+30, %v1124_v26 }
 0x44a   : > { %1133 = vmax.xlane.f32.xlu0 %v1132_v29  ;;  %v1129_v32 = vsel %vm1128_vm3, %v1126_v30, -inf }
 0x44b   : > { %1130 = vmax.xlane.f32.xlu1 %v1129_v32 }
 0x45c   : > { %1239 = vrot.lane.b32.xlu1 %v5179_v6, %s5892_s27 }
 0x460   : > { %1151 = vrot.lane.b32.xlu0 %v5179_v6, %s5890_s30 }
 0x464   : > { %1237 = vrot.lane.b32.xlu0 %v1040_v7, %s5890_s30 }
 0x4d7   : > { %v1134_v33 = vpop.xlane.xlu0 %1133 }
 0x4d8   : > { %v1136_v35 = vsub.f32 %v1127_v27, %v1134_v33  ;;  %v1131_v36 = vpop.xlane.xlu1 %1130 }
 0x4d9   : > { %v1135_v39 = vsub.f32 %v1126_v30, %v1131_v36 }
 0x4da   : > { %v1139_v41 = vmul.f32 1.442695, %v1136_v35 }
 0x4db   : > { %v1137_v42 = vmul.f32 1.442695, %v1135_v39  ;;  %v1152_v43 = vpop.permute.xlu0 %1151 }
 0x4dc   : > { %4607 = vpow2.f32 %v1139_v41  ;;  %4092 = vmatprep.subr.mxu1 %v1152_v43  ;;  %v1240_v47 = vpop.permute.xlu1 %1239 }
 0x4dd   : > { %4093 = vmatpush3.msra.mxu1 %v1152_v43  ;;  %4609 = vpow2.f32 %v1137_v42 }
 0x4de   : > { %4097 = vmatprep.subr.msk.mxu1 %vm1041_vm1, %v1240_v47 }
 0x4df   : > { %v1238_v7 = vpop.permute.xlu0 %1237 }
 0x4e6   : > { %v4608_v48 = vpop.eup %4607 }
 0x4e7   : > { %v1144_v49 = vsel %vm1128_vm3, %v4608_v48, 0.0  ;;  %v4610_v51 = vpop.eup %4609 }
 0x4e8   : > { %1145 = vadd.xlane.f32.xlu1 %v1144_v49  ;;  %v1141_v53 = vsel %vm1128_vm3, %v4610_v51, 0.0 }
 0x4ec   : > { %1142 = vadd.xlane.f32.xlu1 %v1141_v53 }
 0x4fd   : > { %1235 = vrot.lane.b32.xlu1 %v1028_v59, %s5890_s30 }
 0x575   : > { %v1146_v55 = vpop.xlane.xlu1 %1145 }
 0x576   : > { %4611 = vrcp.f32 %v1146_v55  ;;  %v4426_v55 = vld [vmem:[%s5873_s15 + $0x8] sm:$0xff]  }
 0x579   : > { %v1143_v58 = vpop.xlane.xlu1 %1142 }
 0x57a   : > { %4613 = vrcp.f32 %v1143_v58  ;;  %v4427_v58 = vld [vmem:[%s5873_s15 + $0x10] sm:$0xff]  }
 0x57d   : > { %v1236_v4 = vpop.permute.xlu1 %1235 }
 0x580   : > { %v4612_v61 = vpop.eup %4611 }
 0x581   : > { %v1150_v3 = vmul.f32 %v4612_v61, %v4608_v48  ;;  %v4428_v61 = vld [vmem:[%s5873_s15 + $0x18] sm:$0xff]  }
 0x584   : > { %v4614_v0 = vpop.eup %4613 }
 0x585   : > { %v1148_v1 = vmul.f32 %v4614_v0, %v4610_v51  ;;  %v4429_v0 = vld [vmem:[%s5873_s15 + $0x20] sm:$0xff]  }
 0x587   : > { %4094 = vmatprep.mubr.msk.f32.mxu1 %vm1128_vm3, %v1148_v1  ;;  %v4430_v1 = vld [vmem:[%s5873_s15 + $0x28] sm:$0xff]  }
 0x588   : > { %4095 = vmatmul.mubr.msk.f32.vlgmr.msra.gmra.mrb[4].mxu1 %vm1128_vm3, %v1150_v3  ;;  %v4431_v3 = vld [vmem:[%s5873_s15 + $0x30] sm:$0xff]  }
 0x589   : > { %4098 = vmatpush3.xpose.msk.msra.mxu1 %vm1041_vm1, %v1240_v47  ;;  %4099 = vmatprep.mubr.msk.f32.mxu1 %vm1041_vm1, %v1236_v4  ;;  %v4432_v4 = vld [vmem:[%s5873_s15 + $0x38] sm:$0xff]  }
 0x58c   : > { %4100 = vmatmul.mubr.msk.f32.vlgmr.msra.gmra.mrb[6].mxu1 %vm1041_vm1, %v1238_v7 }
 0x65b   : > { %v4096_v59 = vpop.f32.mrb[4].mxu1 }
 0x65c   : > { %v5214_v9 = vpop.f32.mrb[5].mxu1 }
 0x65f   : > { %v4101_v10 = vpop.f32.mrb[6].mxu1 }
 0x660   : > { %v1323_v13 = vmul.f32 0.17677669, %v4101_v10  ;;  %v1313_v14 = vpop.f32.mrb[7].mxu1 }
 0x661   : > { %v1322_v16 = vmul.f32 0.17677669, %v1313_v14 }
 0x662   : > { %v1325_v17 = vsel %vm5186_vm2, -1e+30, %v1323_v13 }
 0x663   : > { %v1329_v18 = vsel %vm1128_vm3, %v1325_v17, -inf  ;;  %v1324_v20 = vsel %vm5190_vm4, -1e+30, %v1322_v16 }
 0x664   : > { %1330 = vmax.xlane.f32.xlu0 %v1329_v18  ;;  %v1326_v23 = vsel %vm1128_vm3, %v1324_v20, -inf }
 0x665   : > { %1327 = vmax.xlane.f32.xlu1 %v1326_v23  ;;  %v4433_v23 = vld [vmem:[%s5874_s16] ss:$16 sps:$4 sm:$0xff]  }
 0x6f1   : > { %v1331_v26 = vpop.xlane.xlu0 %1330 }
 0x6f2   : > { %v1333_v27 = vsub.f32 %v1325_v17, %v1331_v26  ;;  %v1328_v29 = vpop.xlane.xlu1 %1327  ;;  %v4435_v26 = vld [vmem:[%s5874_s16 + $0x4] ss:$16 sps:$4 sm:$0xff]  }
 0x6f3   : > { %v1332_v30 = vsub.f32 %v1324_v20, %v1328_v29  ;;  %v4441_v29 = vld [vmem:[%s5874_s16 + $0x24] ss:$16 sps:$4 sm:$0xff]   ;;  %1763 = vmatprep.subr.bf16.mxu0 %v4435_v26  ;;  %v4475_v26 = vld [vmem:[%s5874_s16 + $0xe0] ss:$16 sps:$4 sm:$0xff]  }
 0x6f4   : > { %v1336_v32 = vmul.f32 1.442695, %v1333_v27  ;;  %v4438_v27 = vld [vmem:[%s5874_s16 + $0xc] ss:$16 sps:$4 sm:$0xff]   ;;  %1764 = vmatpush1.bf16.msra.mxu0 %v4433_v23 }
 0x6f5   : > { %v1334_v33 = vmul.f32 1.442695, %v1332_v30  ;;  %v4444_v30 = vld [vmem:[%s5874_s16 + $0x2c] ss:$16 sps:$4 sm:$0xff]   ;;  %1765 = vmatprep.subr.bf16.mxu0 %v4441_v29 }
 0x6f6   : > { %4615 = vpow2.f32 %v1336_v32  ;;  %v4439_v32 = vld [vmem:[%s5874_s16 + $0x20] ss:$16 sps:$4 sm:$0xff]   ;;  %v4480_v23 = vld [vmem:[%s5874_s16 + $0xec] ss:$16 sps:$4 sm:$0xff]  }
 0x6f7   : > { %4617 = vpow2.f32 %v1334_v33  ;;  %v4442_v33 = vld [vmem:[%s5874_s16 + $0x28] ss:$16 sps:$4 sm:$0xff]  }
 0x6f8   : > { %1766 = vmatpush1.bf16.msra.mxu0 %v4439_v32 }
 0x700   : > { %v4616_v35 = vpop.eup %4615 }
 0x701   : > { %v4618_v36 = vpop.eup %4617  ;;  %v1341_v39 = vsel %vm1128_vm3, %v4616_v35, 0.0 }
 0x702   : > { %1342 = vadd.xlane.f32.xlu1 %v1341_v39  ;;  %v1338_v41 = vsel %vm1128_vm3, %v4618_v36, 0.0  ;;  %v4445_v39 = vld [vmem:[%s5874_s16 + $0x40] ss:$16 sps:$4 sm:$0xff]  }
 0x703   : > { %1339 = vadd.xlane.f32.xlu0 %v1338_v41  ;;  %v4448_v41 = vld [vmem:[%s5874_s16 + $0x48] ss:$16 sps:$4 sm:$0xff]  }
 0x713   : > { %1433 = vrot.lane.b32.xlu1 %v4096_v59, %s5888_s0 }
 0x719   : > { %1348 = vrot.lane.b32.xlu0 %v5179_v6, %s5888_s0  ;;  %v4425_v6 = vld [vmem:[%s5873_s15] sm:$0xff]   ;;  %s5920_s0 = smov 32  }
 0x78f   : > { %v1343_v42 = vpop.xlane.xlu1 %1342 }
 0x790   : > { %4619 = vrcp.f32 %v1343_v42  ;;  %v1340_v43 = vpop.xlane.xlu0 %1339 }
 0x791   : > { %4621 = vrcp.f32 %v1340_v43  ;;  %v4667_v43 = vld [vmem:[%s4915_s24] sm:$0xff] }
 0x793   : > { %v1434_v10 = vpop.permute.xlu1 %1433 }
 0x794   : > { %v1349_v47 = vpop.permute.xlu0 %1348  ;;  %v1444_v13 = vsel %vm1041_vm1, %v5214_v9, %v1434_v10  ;;  %v4436_v9 = vld [vmem:[%s5874_s16 + $0x8] ss:$16 sps:$4 sm:$0xff]   ;;  %v4463_v10 = vld [vmem:[%s5874_s16 + $0xa0] ss:$16 sps:$4 sm:$0xff]  }
 0x795   : > { %4102 = vmatprep.subr.mxu1 %v1349_v47 }
 0x796   : > { %4103 = vmatpush3.msra.mxu1 %v1349_v47 }
 0x797   : > { %4107 = vmatprep.subr.bf16.mxu1 %v4735_v12 }
 0x79a   : > { %v4620_v48 = vpop.eup %4619 }
 0x79b   : > { %v4622_v49 = vpop.eup %4621  ;;  %v1347_v53 = vmul.f32 %v4620_v48, %v4616_v35  ;;  %v4447_v35 = vld [vmem:[%s5874_s16 + $0x44] ss:$16 sps:$4 sm:$0xff]  }
 0x79c   : > { %v1345_v51 = vmul.f32 %v4622_v49, %v4618_v36  ;;  %v4450_v36 = vld [vmem:[%s5874_s16 + $0x4c] ss:$16 sps:$4 sm:$0xff]   ;;  %1767 = vmatprep.subr.bf16.mxu0 %v4447_v35 }
 0x79d   : > { %1768 = vmatpush1.bf16.msra.mxu0 %v4445_v39 }
 0x79e   : > { %4104 = vmatprep.mubr.msk.f32.mxu1 %vm1128_vm3, %v1345_v51 }
 0x79f   : > { %4105 = vmatmul.mubr.msk.f32.vlgmr.msra.gmra.mrb[8].mxu1 %vm1128_vm3, %v1347_v53 }
 0x7a0   : > { %4123 = vmatprep.mubr.msk.bf16.mxu1 %vm4734_vm0, %v4735_v12  ;;  %4108 = vmatpush3.bf16.msra.mxu1 %v4425_v6  ;;  %v4453_v6 = vld [vmem:[%s5874_s16 + $0x64] ss:$16 sps:$4 sm:$0xff]  }
 0x7a1   : > { %4109 = vmatprep.subr.bf16.mxu1 %v4735_v12  ;;  %1769 = vmatprep.subr.bf16.mxu0 %v4453_v6  ;;  %v4488_v6 = vld [vmem:[%s5875_s17 + $0x18] sm:$0xff]  }
 0x7a4   : > { %4110 = vmatpush3.bf16.msra.mxu1 %v4426_v55  ;;  %v4456_v55 = vld [vmem:[%s5874_s16 + $0x6c] ss:$16 sps:$4 sm:$0xff]  }
 0x7a5   : > { %4111 = vmatprep.subr.bf16.mxu1 %v4735_v12 }
 0x7a8   : > { %4112 = vmatpush3.bf16.msra.mxu1 %v4427_v58  ;;  %v4451_v58 = vld [vmem:[%s5874_s16 + $0x60] ss:$16 sps:$4 sm:$0xff]  }
 0x7a9   : > { %4113 = vmatprep.subr.bf16.mxu1 %v4735_v12  ;;  %1770 = vmatpush1.bf16.msra.mxu0 %v4451_v58  ;;  %v4490_v58 = vld [vmem:[%s5875_s17 + $0x20] sm:$0xff]  }
 0x7ac   : > { %4114 = vmatpush3.bf16.msra.mxu1 %v4428_v61  ;;  %v4454_v61 = vld [vmem:[%s5874_s16 + $0x68] ss:$16 sps:$4 sm:$0xff]  }
 0x7ad   : > { %4115 = vmatprep.subr.bf16.mxu1 %v4735_v12 }
 0x7b0   : > { %4116 = vmatpush3.bf16.msra.mxu1 %v4429_v0  ;;  %v4457_v0 = vld [vmem:[%s5874_s16 + $0x80] ss:$16 sps:$4 sm:$0xff]  }
 0x7b1   : > { %4117 = vmatprep.subr.bf16.mxu1 %v4735_v12 }
 0x7b4   : > { %4118 = vmatpush3.bf16.msra.mxu1 %v4430_v1  ;;  %v4459_v1 = vld [vmem:[%s5874_s16 + $0x84] ss:$16 sps:$4 sm:$0xff]  }
 0x7b5   : > { %4119 = vmatprep.subr.bf16.mxu1 %v4735_v12  ;;  %1771 = vmatprep.subr.bf16.mxu0 %v4459_v1  ;;  %v4493_v1 = vld [vmem:[%s5875_s17 + $0x70] sm:$0xff]  }
 0x7b6   : > { %1772 = vmatpush1.bf16.msra.mxu0 %v4457_v0  ;;  %v4492_v0 = vld [vmem:[%s5875_s17 + $0x28] sm:$0xff]  }
 0x7b8   : > { %4120 = vmatpush3.bf16.msra.mxu1 %v4431_v3  ;;  %v4460_v3 = vld [vmem:[%s5874_s16 + $0x88] ss:$16 sps:$4 sm:$0xff]  }
 0x7b9   : > { %4121 = vmatprep.subr.bf16.mxu1 %v4735_v12 }
 0x7bc   : > { %4122 = vmatpush3.bf16.msra.mxu1 %v4432_v4  ;;  %v4462_v4 = vld [vmem:[%s5874_s16 + $0x8c] ss:$16 sps:$4 sm:$0xff]  }
 0x7bd   : > { %1804 = vmatprep.subr.bf16.mxu1 %v4438_v27 }
 0x872   : > { %v4106_v7 = vpop.f32.mrb[8].mxu1 }
 0x873   : > { %1441 = vrot.lane.b32.xlu0 %v4106_v7, %s5892_s27  ;;  %v1423_v59 = vpop.f32.mrb[9].mxu1  ;;  %v4465_v7 = vld [vmem:[%s5874_s16 + $0xa4] ss:$16 sps:$4 sm:$0xff]  }
 0x874   : > { %1437 = vrot.lane.b32.xlu1 %v1423_v59, %s5890_s30  ;;  %v4468_v59 = vld [vmem:[%s5874_s16 + $0xac] ss:$16 sps:$4 sm:$0xff]   ;;  %1773 = vmatprep.subr.bf16.mxu0 %v4465_v7  ;;  %s3499_s30 = sshll.u32 %s620_s20, 4  ;;  %s5813_s30 = int_to_ptr.vmem [resolvable:$true] %s3499_s30 }
 0x875   : > { %1774 = vmatpush1.bf16.msra.mxu0 %v4463_v10  ;;  %v4496_v7 = vld [vmem:[%s5875_s17 + $0x38] sm:$0xff]   ;;  %s4668_s21 = scalar_lea.vmem %s5813_s30, 128 }
 0x876   : > { %p4669_p11 = scmp.ne.s32.totalorder %s5813_s30, %s4668_s21 }
 0x878   : > { %p4670_p12 = pnand %p4669_p11, %p4885_p5 }
 0x87a   : > { %p4671_p13 = pneg %p4670_p12 }
 0x8e5   : > { %v1442_v16 = vpop.permute.xlu0 %1441 }
 0x8e6   : > { %v1438_v14 = vpop.permute.xlu1 %1437 }
 0x8e7   : > { %v1446_v17 = vsel %vm1445_vm5, %v1444_v13, %v1438_v14  ;;  %v4466_v13 = vld [vmem:[%s5874_s16 + $0xa8] ss:$16 sps:$4 sm:$0xff]   ;;  %v4471_v14 = vld [vmem:[%s5874_s16 + $0xc4] ss:$16 sps:$4 sm:$0xff]  }
 0x8e8   : > { %v1448_v18 = vsel %vm1447_vm6, %v1446_v17, %v1442_v16  ;;  %v4474_v16 = vld [vmem:[%s5874_s16 + $0xcc] ss:$16 sps:$4 sm:$0xff]   ;;  %v4469_v17 = vld [vmem:[%s5874_s16 + $0xc0] ss:$16 sps:$4 sm:$0xff]   ;;  %1775 = vmatprep.subr.bf16.mxu0 %v4471_v14 }
 0x8e9   : > { %v1449_v20 = vpack.c.bf16 %v1448_v18, %v1448_v18  ;;  %v4472_v18 = vld [vmem:[%s5874_s16 + $0xc8] ss:$16 sps:$4 sm:$0xff]   ;;  %1776 = vmatpush1.bf16.msra.mxu0 %v4469_v17 }
 0x8eb   : > { %4124 = vmatmul.mubr.bf16.vlgmr.msra.gmra.mrb[12].mxu1 %v1449_v20  ;;  %v4477_v20 = vld [vmem:[%s5874_s16 + $0xe4] ss:$16 sps:$4 sm:$0xff]  }
 0x8ec   : > { %1836 = vmatprep.mubr.bf16.mxu1 %v4732_v15  ;;  %1805 = vmatpush1.bf16.msra.mxu1 %v4436_v9  ;;  %v4478_v9 = vld [vmem:[%s5874_s16 + $0xe8] ss:$16 sps:$4 sm:$0xff]  }
 0x8ed   : > { %1806 = vmatprep.subr.bf16.mxu1 %v4444_v30  ;;  %1777 = vmatprep.subr.bf16.mxu0 %v4477_v20 }
 0x8ee   : > { %1778 = vmatpush1.bf16.msra.mxu0 %v4475_v26 }
 0x8f0   : > { %1807 = vmatpush1.bf16.msra.mxu1 %v4442_v33  ;;  %v3602_v33 = vld [vmem:[%s5869_s11] ss:$0 sm:$0xff] }
 0x8f1   : > { %1808 = vmatprep.subr.bf16.mxu1 %v4450_v36 }
 0x8f4   : > { %1809 = vmatpush1.bf16.msra.mxu1 %v4448_v41  ;;  %v4481_v41 = vld [vmem:[%s5875_s17 + $0x40] sm:$0xff]  }
 0x8f5   : > { %1810 = vmatprep.subr.bf16.mxu1 %v4456_v55  ;;  %3909 = vmatprep.subr.bf16.mxu0 %v4481_v41  ;;  %v4489_v55 = vld [vmem:[%s5875_s17 + $0x60] sm:$0xff]  }
 0x8f8   : > { %1811 = vmatpush1.bf16.msra.mxu1 %v4454_v61  ;;  %v4491_v61 = vld [vmem:[%s5875_s17 + $0x68] sm:$0xff]  }
 0x8f9   : > { %1812 = vmatprep.subr.bf16.mxu1 %v4462_v4  ;;  %v4495_v4 = vld [vmem:[%s5875_s17 + $0x78] sm:$0xff]  }
 0x8fc   : > { %1813 = vmatpush1.bf16.msra.mxu1 %v4460_v3  ;;  %v4494_v3 = vld [vmem:[%s5875_s17 + $0x30] sm:$0xff]  }
 0x8fd   : > { %1814 = vmatprep.subr.bf16.mxu1 %v4468_v59 }
 0x900   : > { %1815 = vmatpush1.bf16.msra.mxu1 %v4466_v13 }
 0x901   : > { %1816 = vmatprep.subr.bf16.mxu1 %v4474_v16 }
 0x904   : > { %1817 = vmatpush1.bf16.msra.mxu1 %v4472_v18 }
 0x905   : > { %1818 = vmatprep.subr.bf16.mxu1 %v4480_v23 }
 0x908   : > { %1819 = vmatpush1.bf16.msra.mxu1 %v4478_v9 }
 0x9be   : > { %v1548_v42 = vpop.f32.mrb[12].mxu1 }
 0x9bf   : > { %v5307_v47 = vadd.f32 %v4667_v43, %v1548_v42  ;;  %v4125_v48 = vpop.f32.mrb[13].mxu1  ;;  %v4482_v42 = vld [vmem:[%s5875_s17] sm:$0xff]   ;;  %v4483_v43 = vld [vmem:[%s5875_s17 + $0x48] sm:$0xff]  }
 0x9c0   : > { %v1551_v49 = vpop.f32.mrb[14].mxu1  ;;  %v4484_v48 = vld [vmem:[%s5875_s17 + $0x8] sm:$0xff]  }
 0x9c1   : > { %v4126_v51 = vpop.f32.mrb[15].mxu1  ;;  %v1556_v53 = vmul.f32 %v5307_v47, %v5307_v47  ;;  %v4485_v49 = vld [vmem:[%s5875_s17 + $0x50] sm:$0xff]  }
 0x9c2   : > { %v4486_v51 = vld [vmem:[%s5875_s17 + $0x10] sm:$0xff]  }
 0x9c3   : > { %1557 = vadd.xlane.f32.xlu1 %v1556_v53  ;;  %v4487_v53 = vld [vmem:[%s5875_s17 + $0x58] sm:$0xff]  }
 0xa50   : > { %v1558_v27 = vpop.xlane.xlu1 %1557 }
 0xa51   : > { %v1559_v29 = vmul.f32 0.0078125, %v1558_v27 }
 0xa53   : > { %v1560_v30 = vadd.f32 1e-06, %v1559_v29 }
 0xa55   : > { %4623 = vrsqrt.f32 %v1560_v30 }
 0xa5f   : > { %v4624_v32 = vpop.eup %4623 }
 0xa60   : > { %v1562_v35 = vmul.f32 %v4624_v32, %v5307_v47 }
 0xa62   : > { %v1569_v36 = vmul.f32 %v3602_v33, %v1562_v35 }
 0xa64   : > { %v1570_v39 = vpack.c.bf16 %v1569_v36, %v1569_v36 }
 0xa66   : > { %1796 = vmatmul.mubr.bf16.vlgmr.msra.gmra.mrb[8].mxu0 %v1570_v39  ;;  %1837 = vmatmul.mubr.bf16.vlgmr.msra.gmra.mrb[16].mxu1 %v1570_v39 }
 0xa67   : > { %2178 = vmatprep.mubr.bf16.mxu1 %v4732_v15  ;;  %3910 = vmatpush3.bf16.msra.mxu0 %v4482_v42 }
 0xa68   : > { %3911 = vmatprep.subr.bf16.mxu0 %v4483_v43 }
 0xa6b   : > { %3912 = vmatpush3.bf16.msra.mxu0 %v4484_v48 }
 0xa6c   : > { %3913 = vmatprep.subr.bf16.mxu0 %v4485_v49 }
 0xa6f   : > { %3914 = vmatpush3.bf16.msra.mxu0 %v4486_v51 }
 0xa70   : > { %3915 = vmatprep.subr.bf16.mxu0 %v4487_v53 }
 0xa73   : > { %3916 = vmatpush3.bf16.msra.mxu0 %v4488_v6 }
 0xa74   : > { %3917 = vmatprep.subr.bf16.mxu0 %v4489_v55  ;;  %v4508_v55 = vld [vmem:[%s5872_s14 + $0xb4] ss:$8 sps:$4 sm:$0xff]  }
 0xa77   : > { %3918 = vmatpush3.bf16.msra.mxu0 %v4490_v58  ;;  %v4506_v58 = vld [vmem:[%s5872_s14 + $0xb0] ss:$8 sps:$4 sm:$0xff]  }
 0xa78   : > { %3919 = vmatprep.subr.bf16.mxu0 %v4491_v61  ;;  %v4509_v61 = vld [vmem:[%s5872_s14 + $0xc0] ss:$8 sps:$4 sm:$0xff]  }
 0xa7b   : > { %3920 = vmatpush3.bf16.msra.mxu0 %v4492_v0  ;;  %v4514_v0 = vld [vmem:[%s5872_s14 + $0xd4] ss:$8 sps:$4 sm:$0xff]  }
 0xa7c   : > { %3921 = vmatprep.subr.bf16.mxu0 %v4493_v1  ;;  %v4512_v1 = vld [vmem:[%s5872_s14 + $0xd0] ss:$8 sps:$4 sm:$0xff]  }
 0xa7f   : > { %3922 = vmatpush3.bf16.msra.mxu0 %v4494_v3  ;;  %v4517_v3 = vld [vmem:[%s5872_s14 + $0xe4] ss:$8 sps:$4 sm:$0xff]  }
 0xa80   : > { %3923 = vmatprep.subr.bf16.mxu0 %v4495_v4  ;;  %v4515_v4 = vld [vmem:[%s5872_s14 + $0xe0] ss:$8 sps:$4 sm:$0xff]  }
 0xa83   : > { %3924 = vmatpush3.bf16.msra.mxu0 %v4496_v7  ;;  %v4520_v7 = vld [vmem:[%s5872_s14 + $0xf4] ss:$8 sps:$4 sm:$0xff]  }
 0xa84   : > { %4305 = vmatprep.subr.bf16.mxu0 %v4733_v21 }
 0xb39   : > { %v1797_v59 = vpop.f32.mrb[8].mxu0  ;;  %v1838_v10 = vpop.f32.mrb[16].mxu1 }
 0xb3a   : > { %v3635_v13 = vmul.f32 -1.442695, %v1797_v59  ;;  %v1799_v14 = vpop.f32.mrb[9].mxu0  ;;  %v1840_v16 = vpop.f32.mrb[17].mxu1 }
 0xb3b   : > { %v3636_v17 = vmul.f32 -1.442695, %v1799_v14  ;;  %v1801_v18 = vpop.f32.mrb[10].mxu0  ;;  %v1842_v20 = vpop.f32.mrb[18].mxu1 }
 0xb3c   : > { %4625 = vpow2.f32 %v3635_v13  ;;  %v1802_v23 = vpop.f32.mrb[11].mxu0  ;;  %v1843_v26 = vpop.f32.mrb[19].mxu1 }
 0xb3d   : > { %4627 = vpow2.f32 %v3636_v17  ;;  %v3654_v17 = vld [vmem:[%s5868_s10 + $0x1] ss:$0 sm:$0xff] }
 0xb46   : > { %v4626_v9 = vpop.eup %4625 }
 0xb47   : > { %v4628_v27 = vpop.eup %4627  ;;  %v1851_v29 = vadd.f32 1.0, %v4626_v9 }
 0xb48   : > { %v1852_v30 = vadd.f32 1.0, %v4628_v27 }
 0xb49   : > { %4629 = vrcp.f32 %v1851_v29 }
 0xb4a   : > { %4631 = vrcp.f32 %v1852_v30 }
 0xb53   : > { %v4630_v32 = vpop.eup %4629 }
 0xb54   : > { %v4632_v33 = vpop.eup %4631  ;;  %v1857_v35 = vmul.f32 %v4630_v32, %v1797_v59  ;;  %v4518_v59 = vld [vmem:[%s5872_s14 + $0xf0] ss:$8 sps:$4 sm:$0xff]   ;;  %v3688_v32 = vld [vmem:[%s5870_s12 + $0x1] ss:$0 sm:$0xff] }
 0xb55   : > { %v1858_v36 = vmul.f32 %v4632_v33, %v1799_v14 }
 0xb56   : > { %v1859_v39 = vmul.f32 %v1857_v35, %v1838_v10 }
 0xb57   : > { %v1860_v41 = vmul.f32 %v1858_v36, %v1840_v16 }
 0xb58   : > { %v1861_v43 = vpack.c.bf16 %v1859_v39, %v1859_v39 }
 0xb59   : > { %v1862_v42 = vpack.c.bf16 %v1860_v41, %v1860_v41 }
 0xb5b   : > { %2023 = vmatprep.mubr.bf16.mxu0 %v1862_v42 }
 0xb5c   : > { %2024 = vmatmul.mubr.bf16.vlgmr.msra.gmra.mrb[12].mxu0 %v1861_v43 }
 0xb5d   : > { %4307 = vmatpush3.bf16.msra.mxu0 %v4963_v22  ;;  %4159 = vmatprep.mubr.msk.f32.mxu0 %vm4734_vm0, %v4735_v12  ;;  %v4497_v22 = vld [vmem:[%s5872_s14 + $0x80] ss:$8 sps:$4 sm:$0xff]  }
 0xb5e   : > { %4308 = vmatprep.subr.bf16.mxu0 %v4733_v21 }
 0xb61   : > { %4310 = vmatpush3.bf16.msra.mxu0 %v4973_v25  ;;  %v4499_v25 = vld [vmem:[%s5872_s14 + $0x84] ss:$8 sps:$4 sm:$0xff]  }
 0xb62   : > { %4311 = vmatprep.subr.bf16.mxu0 %v4733_v21  ;;  %2146 = vmatprep.subr.bf16.mxu1 %v4499_v25 }
 0xb63   : > { %2147 = vmatpush1.bf16.msra.mxu1 %v4497_v22 }
 0xb65   : > { %4313 = vmatpush3.bf16.msra.mxu0 %v4983_v28  ;;  %v4502_v28 = vld [vmem:[%s5872_s14 + $0x94] ss:$8 sps:$4 sm:$0xff]  }
 0xb66   : > { %4314 = vmatprep.subr.bf16.mxu0 %v4733_v21  ;;  %2148 = vmatprep.subr.bf16.mxu1 %v4502_v28 }
 0xb69   : > { %4316 = vmatpush3.bf16.msra.mxu0 %v4993_v31  ;;  %v4500_v31 = vld [vmem:[%s5872_s14 + $0x90] ss:$8 sps:$4 sm:$0xff]  }
 0xb6a   : > { %4317 = vmatprep.subr.bf16.mxu0 %v4733_v21  ;;  %2149 = vmatpush1.bf16.msra.mxu1 %v4500_v31 }
 0xb6d   : > { %4319 = vmatpush3.bf16.msra.mxu0 %v5003_v34  ;;  %v4505_v34 = vld [vmem:[%s5872_s14 + $0xa4] ss:$8 sps:$4 sm:$0xff]  }
 0xb6e   : > { %4320 = vmatprep.subr.bf16.mxu0 %v4733_v21  ;;  %2150 = vmatprep.subr.bf16.mxu1 %v4505_v34 }
 0xb71   : > { %4322 = vmatpush3.bf16.msra.mxu0 %v5013_v37  ;;  %v4503_v37 = vld [vmem:[%s5872_s14 + $0xa0] ss:$8 sps:$4 sm:$0xff]  }
 0xb72   : > { %4323 = vmatprep.subr.bf16.mxu0 %v4733_v21  ;;  %2151 = vmatpush1.bf16.msra.mxu1 %v4503_v37 }
 0xb73   : > { %2152 = vmatprep.subr.bf16.mxu1 %v4508_v55 }
 0xb75   : > { %4325 = vmatpush3.bf16.msra.mxu0 %v5023_v40 }
 0xb76   : > { %4326 = vmatprep.subr.bf16.mxu0 %v4733_v21  ;;  %2153 = vmatpush1.bf16.msra.mxu1 %v4506_v58 }
 0xb79   : > { %4328 = vmatpush3.bf16.msra.mxu0 %v5108_v8 }
 0xb7a   : > { %4217 = vmatprep.subr.bf16.mxu0 %v4735_v12 }
 0xc2f   : > { %v3925_v40 = vpop.f32.mrb[12].mxu0 }
 0xc30   : > { %v3926_v8 = vpop.f32.mrb[13].mxu0 }
 0xc31   : > { %v3927_v48 = vadd.f32 %v3926_v8, %v3925_v40  ;;  %v3928_v49 = vpop.f32.mrb[14].mxu0 }
 0xc32   : > { %v3929_v51 = vpop.f32.mrb[15].mxu0 }
 0xc33   : > { %v5462_v53 = vadd.f32 %v3927_v48, %v5307_v47  ;;  %v4511_v47 = vld [vmem:[%s5872_s14 + $0xc4] ss:$8 sps:$4 sm:$0xff]  }
 0xc34   : > { %2154 = vmatprep.subr.bf16.mxu1 %v4511_v47 }
 0xc35   : > { %v2034_v6 = vmul.f32 %v5462_v53, %v5462_v53  ;;  %2155 = vmatpush1.bf16.msra.mxu1 %v4509_v61 }
 0xc36   : > { %2156 = vmatprep.subr.bf16.mxu1 %v4514_v0 }
 0xc37   : > { %2035 = vadd.xlane.f32.xlu0 %v2034_v6 }
 0xc39   : > { %2157 = vmatpush1.bf16.msra.mxu1 %v4512_v1 }
 0xc3a   : > { %2158 = vmatprep.subr.bf16.mxu1 %v4517_v3 }
 0xc3d   : > { %2159 = vmatpush1.bf16.msra.mxu1 %v4515_v4 }
 0xc3e   : > { %2160 = vmatprep.subr.bf16.mxu1 %v4520_v7 }
 0xc41   : > { %2161 = vmatpush1.bf16.msra.mxu1 %v4518_v59 }
 0xc42   : > { %4329 = vmatprep.subr.bf16.mxu1 %v4733_v21 }
 0xcc4   : > { %v2036_v10 = vpop.xlane.xlu0 %2035 }
 0xcc5   : > { %v2037_v13 = vmul.f32 0.0078125, %v2036_v10 }
 0xcc7   : > { %v2038_v14 = vadd.f32 1e-06, %v2037_v13 }
 0xcc9   : > { %4633 = vrsqrt.f32 %v2038_v14 }
 0xcd3   : > { %v4634_v16 = vpop.eup %4633 }
 0xcd4   : > { %v2040_v18 = vmul.f32 %v4634_v16, %v5462_v53 }
 0xcd6   : > { %v2047_v20 = vmul.f32 %v3654_v17, %v2040_v18 }
 0xcd8   : > { %v2048_v23 = vpack.c.bf16 %v2047_v20, %v2047_v20 }
 0xcda   : > { %2179 = vmatmul.mubr.bf16.vlgmr.msra.gmra.mrb[20].mxu1 %v2048_v23 }
 0xcdb   : > { %4331 = vmatpush3.bf16.msra.mxu1 %v5038_v50  ;;  %4194 = vmatprep.mubr.msk.f32.mxu1 %vm4734_vm0, %v4735_v12 }
 0xcdc   : > { %4332 = vmatprep.subr.bf16.mxu1 %v4733_v21 }
 0xcdf   : > { %4334 = vmatpush3.bf16.msra.mxu1 %v5047_v54 }
 0xce0   : > { %4335 = vmatprep.subr.bf16.mxu1 %v4733_v21 }
 0xce3   : > { %4337 = vmatpush3.bf16.msra.mxu1 %v5057_v57 }
 0xce4   : > { %4338 = vmatprep.subr.bf16.mxu1 %v4733_v21 }
 0xce7   : > { %4340 = vmatpush3.bf16.msra.mxu1 %v5067_v60 }
 0xce8   : > { %4341 = vmatprep.subr.bf16.mxu1 %v4733_v21 }
 0xceb   : > { %4343 = vmatpush3.bf16.msra.mxu1 %v5077_v63 }
 0xcec   : > { %4344 = vmatprep.subr.bf16.mxu1 %v4733_v21 }
 0xcef   : > { %4346 = vmatpush3.bf16.msra.mxu1 %v5087_v2 }
 0xcf0   : > { %4347 = vmatprep.subr.bf16.mxu1 %v4733_v21 }
 0xcf3   : > { %4349 = vmatpush3.bf16.msra.mxu1 %v5097_v5 }
 0xcf4   : > { %4350 = vmatprep.subr.bf16.mxu1 %v4733_v21  ;;  %v3690_v21 = vld [vmem:[%s5871_s13 + $0x1] ss:$0 sm:$0xff] }
 0xcf7   : > { %4352 = vmatpush3.bf16.msra.mxu1 %v5116_v11 }
 0xdad   : > { %v2180_v50 = vpop.f32.mrb[20].mxu1 }
 0xdae   : > { %v2187_v54 = vmul.f32 %v2180_v50, %v2180_v50  ;;  %v2182_v57 = vpop.f32.mrb[21].mxu1 }
 0xdaf   : > { %v2269_v60 = vmul.f32 %v2182_v57, %v2182_v57  ;;  %v2184_v26 = vpop.f32.mrb[22].mxu1 }
 0xdb0   : > { %v2185_v9 = vpop.f32.mrb[23].mxu1  ;;  %4160 = vmatmul.mubr.f32.vlgmr.msra.gmra.mrb[6].mxu0 %v2187_v54 }
 0xdb1   : > { %4195 = vmatmul.mubr.f32.vlgmr.msra.gmra.mrb[10].mxu1 %v2269_v60  ;;  %4233 = vmatprep.mubr.msk.bf16.mxu0 %vm4734_vm0, %v4735_v12 }
 0xe83   : > { %v2254_v63 = vpop.f32.mrb[6].mxu0 }
 0xe84   : > { %v2255_v2 = vadd.f32 1e-06, %v2254_v63  ;;  %v4161_v27 = vpop.f32.mrb[7].mxu0  ;;  %v2336_v29 = vpop.f32.mrb[10].mxu1 }
 0xe85   : > { %v2337_v5 = vadd.f32 1e-06, %v2336_v29  ;;  %v4196_v30 = vpop.f32.mrb[11].mxu1 }
 0xe86   : > { %4635 = vrsqrt.f32 %v2255_v2 }
 0xe87   : > { %4637 = vrsqrt.f32 %v2337_v5 }
 0xe90   : > { %v4636_v11 = vpop.eup %4635 }
 0xe91   : > { %v4638_v33 = vpop.eup %4637  ;;  %v2259_v35 = vmul.f32 %v4636_v11, %v2180_v50 }
 0xe92   : > { %v2349_v36 = vmul.f32 %v4638_v33, %v3690_v21 }
 0xe93   : > { %v2268_v39 = vmul.f32 %v3688_v32, %v2259_v35 }
 0xe94   : > { %v2350_v41 = vadd.f32 %v5134_v38, %v2349_v36 }
 0xe95   : > { %2357 = vrot.lane.b32.xlu1 %v2268_v39, %s4736_s23  ;;  %2353 = vrot.lane.b32.xlu0 %v2268_v39, %s4737_s3  ;;  %v2352_v25 = vmul.f32 %v2268_v39, %v5144_v44 }
 0xe96   : > { %v2351_v42 = vmul.f32 %v2350_v41, %v2182_v57 }
 0xe98   : > { %v2361_v8 = vmul.f32 %v2351_v42, %v5167_v56 }
 0xe99   : > { %2366 = vrot.lane.b32.xlu0 %v2351_v42, %s4736_s23  ;;  %2362 = vrot.lane.b32.xlu1 %v2351_v42, %s4737_s3  ;;  %s5918_s23 = smov 96   ;;  %s5919_s3 = smov 64  }
 0xf07   : > { %v2358_v43 = vpop.permute.xlu1 %2357  ;;  %v2354_v22 = vpop.permute.xlu0 %2353 }
 0xf08   : > { %v2355_v28 = vmul.f32 %v2354_v22, %v5149_v45  ;;  %v2359_v31 = vmul.f32 %v2358_v43, %v5154_v46 }
 0xf0a   : > { %v2356_v34 = vadd.f32 %v2355_v28, %v2352_v25 }
 0xf0b   : > { %v2367_v37 = vpop.permute.xlu0 %2366  ;;  %v2363_v38 = vpop.permute.xlu1 %2362 }
 0xf0c   : > { %v2360_v40 = vadd.f32 %v2359_v31, %v2356_v34  ;;  %v2364_v48 = vmul.f32 %v2363_v38, %v5161_v52  ;;  %v2368_v49 = vmul.f32 %v2367_v37, %v5173_v62 }
 0xf0e   : > { %v2365_v51 = vadd.f32 %v2364_v48, %v2361_v8  ;;  %4199 = vmatprep.mubr.msk.f32.mxu1 %vm1041_vm1, %v2360_v40  ;;  %2371 = vrot.lane.b32.xlu1 %v2360_v40, %s5918_s23  ;;  %v4521_v8 = vld [vmem:[%s5873_s15 + $0x40] sm:$0xff]   ;;  %v4522_v48 = vld [vmem:[%s5873_s15 + $0x48] sm:$0xff]  }
 0xf0f   : > { %4218 = vmatpush3.bf16.msra.mxu0 %v4521_v8  ;;  %v4577_v8 = vld [vmem:[%s5875_s17 + $0xc0] sm:$0xff]  }
 0xf10   : > { %v5539_v44 = vadd.f32 %v2368_v49, %v2365_v51  ;;  %4219 = vmatprep.subr.bf16.mxu0 %v4735_v12  ;;  %v4523_v49 = vld [vmem:[%s5873_s15 + $0x50] sm:$0xff]   ;;  %v4524_v51 = vld [vmem:[%s5873_s15 + $0x58] sm:$0xff]  }
 0xf12   : > { %4197 = vmatprep.subr.msk.mxu1 %vm1041_vm1, %v5539_v44 }
 0xf13   : > { %4198 = vmatpush3.xpose.msk.msra.mxu1 %vm1041_vm1, %v5539_v44  ;;  %4220 = vmatpush3.bf16.msra.mxu0 %v4522_v48  ;;  %v4578_v48 = vld [vmem:[%s5875_s17 + $0x80] sm:$0xff]  }
 0xf14   : > { %4221 = vmatprep.subr.bf16.mxu0 %v4735_v12 }
 0xf17   : > { %4222 = vmatpush3.bf16.msra.mxu0 %v4523_v49  ;;  %v4579_v49 = vld [vmem:[%s5875_s17 + $0xc8] sm:$0xff]  }
 0xf18   : > { %4223 = vmatprep.subr.bf16.mxu0 %v4735_v12 }
 0xf1b   : > { %4224 = vmatpush3.bf16.msra.mxu0 %v4524_v51  ;;  %v4580_v51 = vld [vmem:[%s5875_s17 + $0x88] sm:$0xff]  }
 0xf1c   : > { %4225 = vmatprep.subr.bf16.mxu0 %v4735_v12 }
 0xf80   : > { %v2372_v45 = vpop.permute.xlu1 %2371 }
 0xf81   : > { %4200 = vmatmul.mubr.msk.f32.vlgmr.msra.gmra.mrb[24].mxu1 %vm1041_vm1, %v2372_v45 }
0x1054   : > { %v4201_v46 = vpop.f32.mrb[24].mxu1 }
0x1055   : > { %v2456_v52 = vmul.f32 0.17677669, %v4201_v46  ;;  %v2446_v56 = vpop.f32.mrb[25].mxu1  ;;  %v4527_v46 = vld [vmem:[%s5873_s15 + $0x70] sm:$0xff]  }
0x1056   : > { %v2455_v62 = vmul.f32 0.17677669, %v2446_v56 }
0x1057   : > { %v2458_v6 = vsel %vm5186_vm2, -1e+30, %v2456_v52  ;;  %v4528_v52 = vld [vmem:[%s5873_s15 + $0x78] sm:$0xff]  }
0x1058   : > { %v2462_v55 = vsel %vm1128_vm3, %v2458_v6, -inf  ;;  %v2457_v58 = vsel %vm5190_vm4, -1e+30, %v2455_v62 }
0x1059   : > { %2463 = vmax.xlane.f32.xlu1 %v2462_v55  ;;  %v2459_v61 = vsel %vm1128_vm3, %v2457_v58, -inf }
0x105a   : > { %2460 = vmax.xlane.f32.xlu0 %v2459_v61 }
0x106a   : > { %2481 = vrot.lane.b32.xlu1 %v5539_v44, %s5919_s3 }
0x106e   : > { %2565 = vrot.lane.b32.xlu1 %v2360_v40, %s5919_s3 }
0x1072   : > { %2567 = vrot.lane.b32.xlu1 %v2372_v45, %s5919_s3  ;;  %v4526_v45 = vld [vmem:[%s5873_s15 + $0x68] sm:$0xff]  }
0x10e6   : > { %v2464_v47 = vpop.xlane.xlu1 %2463 }
0x10e7   : > { %v2466_v0 = vsub.f32 %v2458_v6, %v2464_v47  ;;  %v2461_v1 = vpop.xlane.xlu0 %2460 }
0x10e8   : > { %v2465_v3 = vsub.f32 %v2457_v58, %v2461_v1 }
0x10e9   : > { %v2469_v4 = vmul.f32 1.442695, %v2466_v0 }
0x10ea   : > { %v2467_v7 = vmul.f32 1.442695, %v2465_v3  ;;  %v2482_v59 = vpop.permute.xlu1 %2481  ;;  %v4529_v3 = vld [vmem:[%s5874_s16 + $0x100] ss:$16 sps:$4 sm:$0xff]  }
0x10eb   : > { %4639 = vpow2.f32 %v2469_v4  ;;  %4202 = vmatprep.subr.mxu1 %v2482_v59  ;;  %v4531_v4 = vld [vmem:[%s5874_s16 + $0x104] ss:$16 sps:$4 sm:$0xff]  }
0x10ec   : > { %4203 = vmatpush3.msra.mxu1 %v2482_v59  ;;  %4641 = vpow2.f32 %v2467_v7  ;;  %v4532_v7 = vld [vmem:[%s5874_s16 + $0x108] ss:$16 sps:$4 sm:$0xff]   ;;  %v4534_v59 = vld [vmem:[%s5874_s16 + $0x10c] ss:$16 sps:$4 sm:$0xff]  }
0x10ee   : > { %v2566_v54 = vpop.permute.xlu1 %2565 }
0x10f2   : > { %v2568_v26 = vpop.permute.xlu1 %2567 }
0x10f5   : > { %v4640_v10 = vpop.eup %4639 }
0x10f6   : > { %v2474_v13 = vsel %vm1128_vm3, %v4640_v10, 0.0  ;;  %v4642_v14 = vpop.eup %4641 }
0x10f7   : > { %2475 = vadd.xlane.f32.xlu0 %v2474_v13  ;;  %v2471_v16 = vsel %vm1128_vm3, %v4642_v14, 0.0  ;;  %v4535_v13 = vld [vmem:[%s5874_s16 + $0x120] ss:$16 sps:$4 sm:$0xff]  }
0x10fb   : > { %2472 = vadd.xlane.f32.xlu0 %v2471_v16  ;;  %v4543_v16 = vld [vmem:[%s5874_s16 + $0x144] ss:$16 sps:$4 sm:$0xff]  }
0x1111   : > { %2569 = vrot.lane.b32.xlu0 %v5539_v44, %s5918_s23 }
0x1184   : > { %v2476_v17 = vpop.xlane.xlu0 %2475 }
0x1185   : > { %4643 = vrcp.f32 %v2476_v17  ;;  %v4546_v17 = vld [vmem:[%s5874_s16 + $0x14c] ss:$16 sps:$4 sm:$0xff]  }
0x1188   : > { %v2473_v18 = vpop.xlane.xlu0 %2472 }
0x1189   : > { %4645 = vrcp.f32 %v2473_v18  ;;  %v4541_v18 = vld [vmem:[%s5874_s16 + $0x140] ss:$16 sps:$4 sm:$0xff]  }
0x118c   : > { %v2570_v20 = vpop.permute.xlu0 %2569 }
0x118d   : > { %4207 = vmatprep.subr.msk.mxu1 %vm1041_vm1, %v2570_v20 }
0x118f   : > { %v4644_v23 = vpop.eup %4643 }
0x1190   : > { %v2480_v60 = vmul.f32 %v4644_v23, %v4640_v10  ;;  %v4540_v10 = vld [vmem:[%s5874_s16 + $0x12c] ss:$16 sps:$4 sm:$0xff]  }
0x1193   : > { %v4646_v50 = vpop.eup %4645 }
0x1194   : > { %v2478_v57 = vmul.f32 %v4646_v50, %v4642_v14  ;;  %v4538_v14 = vld [vmem:[%s5874_s16 + $0x128] ss:$16 sps:$4 sm:$0xff]  }
0x1196   : > { %4204 = vmatprep.mubr.msk.f32.mxu1 %vm1128_vm3, %v2478_v57 }
0x1197   : > { %4205 = vmatmul.mubr.msk.f32.vlgmr.msra.gmra.mrb[26].mxu1 %vm1128_vm3, %v2480_v60 }
0x1198   : > { %4208 = vmatpush3.xpose.msk.msra.mxu1 %vm1041_vm1, %v2570_v20  ;;  %4209 = vmatprep.mubr.msk.f32.mxu1 %vm1041_vm1, %v2566_v54  ;;  %v4544_v20 = vld [vmem:[%s5874_s16 + $0x148] ss:$16 sps:$4 sm:$0xff]  }
0x119b   : > { %4210 = vmatmul.mubr.msk.f32.vlgmr.msra.gmra.mrb[28].mxu1 %vm1041_vm1, %v2568_v26 }
0x126a   : > { %v4206_v9 = vpop.f32.mrb[26].mxu1 }
0x126b   : > { %v5566_v63 = vpop.f32.mrb[27].mxu1 }
0x126e   : > { %v4211_v2 = vpop.f32.mrb[28].mxu1 }
0x126f   : > { %v2653_v27 = vmul.f32 0.17677669, %v4211_v2  ;;  %v2643_v29 = vpop.f32.mrb[29].mxu1  ;;  %v4550_v2 = vld [vmem:[%s5874_s16 + $0x168] ss:$16 sps:$4 sm:$0xff]  }
0x1270   : > { %v2652_v5 = vmul.f32 0.17677669, %v2643_v29  ;;  %v4555_v29 = vld [vmem:[%s5874_s16 + $0x184] ss:$16 sps:$4 sm:$0xff]  }
0x1271   : > { %v2655_v30 = vsel %vm5186_vm2, -1e+30, %v2653_v27  ;;  %v4553_v27 = vld [vmem:[%s5874_s16 + $0x180] ss:$16 sps:$4 sm:$0xff]  }
0x1272   : > { %v2659_v21 = vsel %vm1128_vm3, %v2655_v30, -inf  ;;  %v2654_v11 = vsel %vm5190_vm4, -1e+30, %v2652_v5  ;;  %v4556_v5 = vld [vmem:[%s5874_s16 + $0x188] ss:$16 sps:$4 sm:$0xff]  }
0x1273   : > { %2660 = vmax.xlane.f32.xlu1 %v2659_v21  ;;  %v2656_v32 = vsel %vm1128_vm3, %v2654_v11, -inf  ;;  %v4561_v21 = vld [vmem:[%s5874_s16 + $0x1a4] ss:$16 sps:$4 sm:$0xff]  }
0x1274   : > { %2657 = vmax.xlane.f32.xlu0 %v2656_v32  ;;  %v4559_v32 = vld [vmem:[%s5874_s16 + $0x1a0] ss:$16 sps:$4 sm:$0xff]  }
0x1284   : > { %2678 = vrot.lane.b32.xlu1 %v5539_v44, %s5920_s0  ;;  %v4525_v44 = vld [vmem:[%s5873_s15 + $0x60] sm:$0xff]  }
0x1285   : > { %4226 = vmatpush3.bf16.msra.mxu0 %v4525_v44  ;;  %v4581_v44 = vld [vmem:[%s5875_s17 + $0xd0] sm:$0xff]  }
0x1286   : > { %4227 = vmatprep.subr.bf16.mxu0 %v4735_v12 }
0x1289   : > { %4228 = vmatpush3.bf16.msra.mxu0 %v4526_v45  ;;  %v4582_v45 = vld [vmem:[%s5875_s17 + $0x90] sm:$0xff]  }
0x128a   : > { %4229 = vmatprep.subr.bf16.mxu0 %v4735_v12 }
0x128d   : > { %4230 = vmatpush3.bf16.msra.mxu0 %v4527_v46  ;;  %v4583_v46 = vld [vmem:[%s5875_s17 + $0xd8] sm:$0xff]  }
0x128e   : > { %4231 = vmatprep.subr.bf16.mxu0 %v4735_v12 }
0x1291   : > { %4232 = vmatpush3.bf16.msra.mxu0 %v4528_v52  ;;  %v4584_v52 = vld [vmem:[%s5875_s17 + $0x98] sm:$0xff]  }
0x1292   : > { %3135 = vmatprep.subr.bf16.mxu0 %v4534_v59 }
0x1300   : > { %v2661_v33 = vpop.xlane.xlu1 %2660 }
0x1301   : > { %v2663_v35 = vsub.f32 %v2655_v30, %v2661_v33  ;;  %v2658_v36 = vpop.xlane.xlu0 %2657  ;;  %v4558_v30 = vld [vmem:[%s5874_s16 + $0x18c] ss:$16 sps:$4 sm:$0xff]   ;;  %v4562_v33 = vld [vmem:[%s5874_s16 + $0x1a8] ss:$16 sps:$4 sm:$0xff]  }
0x1302   : > { %v2662_v39 = vsub.f32 %v2654_v11, %v2658_v36  ;;  %v4564_v11 = vld [vmem:[%s5874_s16 + $0x1ac] ss:$16 sps:$4 sm:$0xff]  }
0x1303   : > { %v2666_v41 = vmul.f32 1.442695, %v2663_v35  ;;  %v4567_v35 = vld [vmem:[%s5874_s16 + $0x1c4] ss:$16 sps:$4 sm:$0xff]   ;;  %v4570_v36 = vld [vmem:[%s5874_s16 + $0x1cc] ss:$16 sps:$4 sm:$0xff]  }
0x1304   : > { %v2664_v42 = vmul.f32 1.442695, %v2662_v39  ;;  %v2679_v19 = vpop.permute.xlu1 %2678  ;;  %v4565_v39 = vld [vmem:[%s5874_s16 + $0x1c0] ss:$16 sps:$4 sm:$0xff]  }
0x1305   : > { %4212 = vmatprep.subr.mxu1 %v2679_v19 }
0x1306   : > { %4647 = vpow2.f32 %v2664_v42  ;;  %4213 = vmatpush3.msra.mxu1 %v2679_v19  ;;  %v4573_v42 = vld [vmem:[%s5874_s16 + $0x1e4] ss:$16 sps:$4 sm:$0xff]   ;;  %v4576_v19 = vld [vmem:[%s5874_s16 + $0x1ec] ss:$16 sps:$4 sm:$0xff]  }
0x1307   : > { %4649 = vpow2.f32 %v2666_v41  ;;  %3094 = vmatprep.subr.bf16.mxu1 %v4531_v4  ;;  %v4568_v41 = vld [vmem:[%s5874_s16 + $0x1c8] ss:$16 sps:$4 sm:$0xff]  }
0x1310   : > { %v4648_v24 = vpop.eup %4647 }
0x1311   : > { %v2668_v43 = vsel %vm1128_vm3, %v4648_v24, 0.0  ;;  %v4650_v22 = vpop.eup %4649 }
0x1312   : > { %2669 = vadd.xlane.f32.xlu0 %v2668_v43  ;;  %v2671_v25 = vsel %vm1128_vm3, %v4650_v22, 0.0  ;;  %v4574_v43 = vld [vmem:[%s5874_s16 + $0x1e8] ss:$16 sps:$4 sm:$0xff]  }
0x1316   : > { %2672 = vadd.xlane.f32.xlu0 %v2671_v25 }
0x132c   : > { %2763 = vrot.lane.b32.xlu0 %v4206_v9, %s5920_s0  ;;  %v4549_v9 = vld [vmem:[%s5874_s16 + $0x164] ss:$16 sps:$4 sm:$0xff]   ;;  %s3851_s0 = sshll.u32 %s4868_s2, 7  ;;  %s4741_s2 = smov [#allocation2]  }
0x132d   : > { %s5818_s29 = scalar_lea.hbm %s5922_s4, %s3851_s0 }
0x139f   : > { %v2670_v28 = vpop.xlane.xlu0 %2669 }
0x13a0   : > { %4651 = vrcp.f32 %v2670_v28 }
0x13a3   : > { %v2673_v31 = vpop.xlane.xlu0 %2672 }
0x13a4   : > { %4653 = vrcp.f32 %v2673_v31 }
0x13a7   : > { %v2764_v6 = vpop.permute.xlu0 %2763 }
0x13a8   : > { %v2774_v58 = vsel %vm1041_vm1, %v5566_v63, %v2764_v6  ;;  %v4552_v63 = vld [vmem:[%s5874_s16 + $0x16c] ss:$16 sps:$4 sm:$0xff]  }
0x13a9   : > { %v4587_v6 = vld [vmem:[%s5875_s17 + $0xe8] sm:$0xff]  }
0x13aa   : > { %v4652_v34 = vpop.eup %4651 }
0x13ab   : > { %v2675_v37 = vmul.f32 %v4652_v34, %v4648_v24  ;;  %v4571_v24 = vld [vmem:[%s5874_s16 + $0x1e0] ss:$16 sps:$4 sm:$0xff]  }
0x13ac   : > { %v3726_v34 = vld [vmem:[%s5869_s11 + $0x1] ss:$0 sm:$0xff] }
0x13ad   : > { %4214 = vmatprep.mubr.msk.f32.mxu1 %vm1128_vm3, %v2675_v37 }
0x13ae   : > { %v4654_v38 = vpop.eup %4653 }
0x13af   : > { %v2677_v40 = vmul.f32 %v4654_v38, %v4650_v22 }
0x13b1   : > { %4215 = vmatmul.mubr.msk.f32.vlgmr.msra.gmra.mrb[30].mxu1 %vm1128_vm3, %v2677_v40 }
0x13b2   : > { %3126 = vmatprep.mubr.bf16.mxu1 %v4732_v15  ;;  %3095 = vmatpush1.bf16.msra.mxu1 %v4529_v3 }
0x1484   : > { %v4216_v56 = vpop.f32.mrb[30].mxu1 }
0x1485   : > { %v2753_v62 = vpop.f32.mrb[31].mxu1 }
0x1486   : > { %2767 = vrot.lane.b32.xlu1 %v2753_v62, %s5919_s3  ;;  %v4586_v62 = vld [vmem:[%s5875_s17 + $0xa0] sm:$0xff]   ;;  %s4672_s3 = sshll.u32 %s4741_s2, 4  ;;  %s4673_s3 = int_to_ptr.vmem [resolvable:$false] %s4672_s3 }
0x1487   : > { %p4675_p0 = scmp.lt.s32.totalorder %s5813_s30, %s4673_s3 }
0x148a   : > { %2771 = vrot.lane.b32.xlu1 %v4216_v56, %s5918_s23  ;;  %v4585_v56 = vld [vmem:[%s5875_s17 + $0xe0] sm:$0xff]   ;;  %s4674_s23 = scalar_lea.vmem %s4673_s3, 256 }
0x148b   : > { %p4676_p1 = scmp.lt.s32.totalorder %s4674_s23, %s4668_s21 }
0x148d   : > { %p4677_p2 = por %p4676_p1, %p4675_p0 }
0x148f   : > { %p4678_p3 = pnand %p4677_p2, %p4671_p13 }
0x14f8   : > { %v2768_v55 = vpop.permute.xlu1 %2767 }
0x14f9   : > { %v2775_v61 = vsel %vm1445_vm5, %v2774_v58, %v2768_v55  ;;  %v4588_v55 = vld [vmem:[%s5875_s17 + $0xa8] sm:$0xff]   ;;  %v4589_v58 = vld [vmem:[%s5875_s17 + $0xf0] sm:$0xff]  }
0x14fc   : > { %v2772_v47 = vpop.permute.xlu1 %2771 }
0x14fd   : > { %v2776_v0 = vsel %vm1447_vm6, %v2775_v61, %v2772_v47  ;;  %v4590_v61 = vld [vmem:[%s5875_s17 + $0xb0] sm:$0xff]   ;;  %v4591_v47 = vld [vmem:[%s5875_s17 + $0xf8] sm:$0xff]  }
0x14fe   : > { %v2777_v1 = vpack.c.bf16 %v2776_v0, %v2776_v0  ;;  %v4592_v0 = vld [vmem:[%s5875_s17 + $0xb8] sm:$0xff]  }
0x1500   : > { %4234 = vmatmul.mubr.bf16.vlgmr.msra.gmra.mrb[16].mxu0 %v2777_v1 }
0x1501   : > { %3167 = vmatprep.mubr.bf16.mxu0 %v4732_v15  ;;  %v4537_v15 = vld [vmem:[%s5874_s16 + $0x124] ss:$16 sps:$4 sm:$0xff]   ;;  %3136 = vmatpush1.bf16.msra.mxu0 %v4532_v7 }
0x1502   : > { %3096 = vmatprep.subr.bf16.mxu1 %v4537_v15  ;;  %3137 = vmatprep.subr.bf16.mxu0 %v4540_v10 }
0x1503   : > { %3097 = vmatpush1.bf16.msra.mxu1 %v4535_v13 }
0x1504   : > { %3098 = vmatprep.subr.bf16.mxu1 %v4543_v16 }
0x1505   : > { %3138 = vmatpush1.bf16.msra.mxu0 %v4538_v14 }
0x1506   : > { %3139 = vmatprep.subr.bf16.mxu0 %v4546_v17 }
0x1507   : > { %3099 = vmatpush1.bf16.msra.mxu1 %v4541_v18 }
0x1508   : > { %3100 = vmatprep.subr.bf16.mxu1 %v4549_v9 }
0x1509   : > { %3140 = vmatpush1.bf16.msra.mxu0 %v4544_v20 }
0x150a   : > { %3141 = vmatprep.subr.bf16.mxu0 %v4552_v63 }
0x150d   : > { %3142 = vmatpush1.bf16.msra.mxu0 %v4550_v2 }
0x150e   : > { %3143 = vmatprep.subr.bf16.mxu0 %v4558_v30 }
0x1511   : > { %3144 = vmatpush1.bf16.msra.mxu0 %v4556_v5  ;;  %v4595_v5 = vld [vmem:[%s5877_s19 + $0x10] sm:$0xff]  }
0x1512   : > { %3145 = vmatprep.subr.bf16.mxu0 %v4564_v11 }
0x1515   : > { %3146 = vmatpush1.bf16.msra.mxu0 %v4562_v33 }
0x1516   : > { %3147 = vmatprep.subr.bf16.mxu0 %v4570_v36 }
0x1519   : > { %3148 = vmatpush1.bf16.msra.mxu0 %v4568_v41  ;;  %v4597_v41 = vld [vmem:[%s5877_s19 + $0x20] sm:$0xff]  }
0x151a   : > { %3149 = vmatprep.subr.bf16.mxu0 %v4576_v19  ;;  %v4600_v19 = vld [vmem:[%s5877_s19 + $0x38] sm:$0xff]  }
0x151d   : > { %3150 = vmatpush1.bf16.msra.mxu0 %v4574_v43 }
0x151e   : > { %4237 = vmatprep.subr.bf16.mxu0 %v4735_v12 }
0x15d3   : > { %v2877_v23 = vpop.f32.mrb[16].mxu0 }
0x15d4   : > { %v5657_v50 = vadd.f32 %v2877_v23, %v5462_v53  ;;  %v4235_v54 = vpop.f32.mrb[17].mxu0  ;;  %v4547_v53 = vld [vmem:[%s5874_s16 + $0x160] ss:$16 sps:$4 sm:$0xff]  }
0x15d5   : > { %v2880_v57 = vpop.f32.mrb[18].mxu0  ;;  %3101 = vmatpush1.bf16.msra.mxu1 %v4547_v53 }
0x15d6   : > { %v4236_v60 = vpop.f32.mrb[19].mxu0  ;;  %v2886_v26 = vmul.f32 %v5657_v50, %v5657_v50  ;;  %3102 = vmatprep.subr.bf16.mxu1 %v4555_v29  ;;  %v4594_v29 = vld [vmem:[%s5877_s19 + $0x8] sm:$0xff]  }
0x15d8   : > { %2887 = vadd.xlane.f32.xlu0 %v2886_v26 }
0x15d9   : > { %3103 = vmatpush1.bf16.msra.mxu1 %v4553_v27  ;;  %v4593_v27 = vld [vmem:[%s5877_s19] sm:$0xff]  }
0x15da   : > { %3104 = vmatprep.subr.bf16.mxu1 %v4561_v21 }
0x15dd   : > { %3105 = vmatpush1.bf16.msra.mxu1 %v4559_v32 }
0x15de   : > { %3106 = vmatprep.subr.bf16.mxu1 %v4567_v35 }
0x15e1   : > { %3107 = vmatpush1.bf16.msra.mxu1 %v4565_v39  ;;  %v4596_v39 = vld [vmem:[%s5877_s19 + $0x18] sm:$0xff]  }
0x15e2   : > { %3108 = vmatprep.subr.bf16.mxu1 %v4573_v42  ;;  %v4598_v42 = vld [vmem:[%s5877_s19 + $0x28] sm:$0xff]  }
0x15e5   : > { %3109 = vmatpush1.bf16.msra.mxu1 %v4571_v24 }
0x15e6   : > { %3986 = vmatprep.subr.bf16.mxu1 %v4577_v8 }
0x1665   : > { %v2888_v22 = vpop.xlane.xlu0 %2887 }
0x1666   : > { %v2889_v25 = vmul.f32 0.0078125, %v2888_v22 }
0x1668   : > { %v2890_v28 = vadd.f32 1e-06, %v2889_v25 }
0x166a   : > { %4655 = vrsqrt.f32 %v2890_v28  ;;  %v3841_v28 = vld [vmem:[%s5876_s18] ss:$0 sm:$0xff] }
0x1674   : > { %v4656_v31 = vpop.eup %4655 }
0x1675   : > { %v2892_v37 = vmul.f32 %v4656_v31, %v5657_v50 }
0x1677   : > { %v2899_v38 = vmul.f32 %v3726_v34, %v2892_v37 }
0x1679   : > { %v2900_v40 = vpack.c.bf16 %v2899_v38, %v2899_v38 }
0x167b   : > { %3127 = vmatmul.mubr.bf16.vlgmr.msra.gmra.mrb[32].mxu1 %v2900_v40  ;;  %3168 = vmatmul.mubr.bf16.vlgmr.msra.gmra.mrb[20].mxu0 %v2900_v40 }
0x167c   : > { %4253 = vmatprep.mubr.msk.bf16.mxu0 %vm4734_vm0, %v4735_v12  ;;  %3987 = vmatpush3.bf16.msra.mxu1 %v4578_v48 }
0x167d   : > { %3988 = vmatprep.subr.bf16.mxu1 %v4579_v49  ;;  %4238 = vmatpush3.bf16.msra.mxu0 %v4593_v27 }
0x167e   : > { %4239 = vmatprep.subr.bf16.mxu0 %v4735_v12 }
0x1680   : > { %3989 = vmatpush3.bf16.msra.mxu1 %v4580_v51 }
0x1681   : > { %3990 = vmatprep.subr.bf16.mxu1 %v4581_v44  ;;  %4240 = vmatpush3.bf16.msra.mxu0 %v4594_v29 }
0x1682   : > { %4241 = vmatprep.subr.bf16.mxu0 %v4735_v12 }
0x1684   : > { %3991 = vmatpush3.bf16.msra.mxu1 %v4582_v45 }
0x1685   : > { %3992 = vmatprep.subr.bf16.mxu1 %v4583_v46  ;;  %4242 = vmatpush3.bf16.msra.mxu0 %v4595_v5 }
0x1686   : > { %4243 = vmatprep.subr.bf16.mxu0 %v4735_v12 }
0x1688   : > { %3993 = vmatpush3.bf16.msra.mxu1 %v4584_v52 }
0x1689   : > { %3994 = vmatprep.subr.bf16.mxu1 %v4585_v56  ;;  %4244 = vmatpush3.bf16.msra.mxu0 %v4596_v39 }
0x168a   : > { %4245 = vmatprep.subr.bf16.mxu0 %v4735_v12 }
0x168c   : > { %3995 = vmatpush3.bf16.msra.mxu1 %v4586_v62 }
0x168d   : > { %3996 = vmatprep.subr.bf16.mxu1 %v4587_v6  ;;  %4246 = vmatpush3.bf16.msra.mxu0 %v4597_v41 }
0x168e   : > { %4247 = vmatprep.subr.bf16.mxu0 %v4735_v12 }
0x1690   : > { %3997 = vmatpush3.bf16.msra.mxu1 %v4588_v55 }
0x1691   : > { %3998 = vmatprep.subr.bf16.mxu1 %v4589_v58  ;;  %4248 = vmatpush3.bf16.msra.mxu0 %v4598_v42 }
0x1692   : > { %4249 = vmatprep.subr.bf16.mxu0 %v4735_v12 }
0x1694   : > { %3999 = vmatpush3.bf16.msra.mxu1 %v4590_v61 }
0x1695   : > { %4000 = vmatprep.subr.bf16.mxu1 %v4591_v47 }
0x1698   : > { %4001 = vmatpush3.bf16.msra.mxu1 %v4592_v0 }
0x174e   : > { %v3128_v1 = vpop.f32.mrb[32].mxu1  ;;  %v3169_v3 = vpop.f32.mrb[20].mxu0 }
0x174f   : > { %v3791_v4 = vmul.f32 -1.442695, %v3128_v1  ;;  %v3130_v7 = vpop.f32.mrb[33].mxu1  ;;  %v3171_v59 = vpop.f32.mrb[21].mxu0 }
0x1750   : > { %v3792_v15 = vmul.f32 -1.442695, %v3130_v7  ;;  %v3132_v10 = vpop.f32.mrb[34].mxu1  ;;  %v3173_v13 = vpop.f32.mrb[22].mxu0 }
0x1751   : > { %4657 = vpow2.f32 %v3791_v4  ;;  %v3133_v14 = vpop.f32.mrb[35].mxu1  ;;  %v3174_v16 = vpop.f32.mrb[23].mxu0 }
0x1752   : > { %4659 = vpow2.f32 %v3792_v15 }
0x175b   : > { %v4658_v17 = vpop.eup %4657 }
0x175c   : > { %v4660_v18 = vpop.eup %4659  ;;  %v3182_v20 = vadd.f32 1.0, %v4658_v17 }
0x175d   : > { %v3183_v23 = vadd.f32 1.0, %v4660_v18 }
0x175e   : > { %4661 = vrcp.f32 %v3182_v20 }
0x175f   : > { %4663 = vrcp.f32 %v3183_v23 }
0x1768   : > { %v4662_v54 = vpop.eup %4661 }
0x1769   : > { %v4664_v57 = vpop.eup %4663  ;;  %v3188_v60 = vmul.f32 %v4662_v54, %v3128_v1 }
0x176a   : > { %v3189_v26 = vmul.f32 %v4664_v57, %v3130_v7 }
0x176b   : > { %v3190_v9 = vmul.f32 %v3188_v60, %v3169_v3 }
0x176c   : > { %v3191_v63 = vmul.f32 %v3189_v26, %v3171_v59 }
0x176d   : > { %v3192_v2 = vpack.c.bf16 %v3190_v9, %v3190_v9 }
0x176e   : > { %v3193_v53 = vpack.c.bf16 %v3191_v63, %v3191_v63 }
0x1770   : > { %3355 = vmatprep.mubr.bf16.mxu1 %v3193_v53 }
0x1771   : > { %3356 = vmatmul.mubr.bf16.vlgmr.msra.gmra.mrb[36].mxu1 %v3192_v2 }
0x1844   : > { %v4002_v30 = vpop.f32.mrb[36].mxu1 }
0x1845   : > { %v4003_v21 = vpop.f32.mrb[37].mxu1 }
0x1846   : > { %v4004_v11 = vadd.f32 %v4003_v21, %v4002_v30  ;;  %v4005_v32 = vpop.f32.mrb[38].mxu1 }
0x1847   : > { %v4006_v33 = vpop.f32.mrb[39].mxu1 }
0x1848   : > { %v3363_v35 = vadd.f32 %v4004_v11, %v5657_v50  ;;  %v4599_v50 = vld [vmem:[%s5877_s19 + $0x30] sm:$0xff]  }
0x1849   : > { %4250 = vmatpush3.bf16.msra.mxu0 %v4599_v50 }
0x184a   : > { %v3365_v36 = vmul.f32 %v3363_v35, %v3363_v35  ;;  %4251 = vmatprep.subr.bf16.mxu0 %v4735_v12 }
0x184c   : > { %3366 = vadd.xlane.f32.xlu1 %v3365_v36 }
0x184d   : > { %4252 = vmatpush3.bf16.msra.mxu0 %v4600_v19 }
0x18d9   : > { %v3367_v24 = vpop.xlane.xlu1 %3366 }
0x18da   : > { %v3368_v43 = vmul.f32 0.0078125, %v3367_v24 }
0x18dc   : > { %v3369_v22 = vadd.f32 1e-06, %v3368_v43 }
0x18de   : > { %4665 = vrsqrt.f32 %v3369_v22 }
0x18e8   : > { %v4666_v25 = vpop.eup %4665 }
0x18e9   : > { %v3371_v31 = vmul.f32 %v4666_v25, %v3363_v35 }
0x18eb   : > { %v3378_v34 = vmul.f32 %v3841_v28, %v3371_v31 }
0x18ed   : > { %v3379_v37 = vpack.c.bf16 %v3378_v34, %v3378_v34 }
0x18ef   : > { %4254 = vmatmul.mubr.bf16.vlgmr.msra.gmra.mrb[24].mxu0 %v3379_v37 }
0x19c2   : > { %v3478_v12 = vpop.f32.mrb[24].mxu0 }
0x19c3   : > { %3484 = vst [vmem:[%s620_s20] sm:$0xff] %v3478_v12  ;;  %v4255_v38 = vpop.f32.mrb[25].mxu0 }
0x19c4   : > { %v3481_v40 = vpop.f32.mrb[26].mxu0 }
0x19c5   : > { %4681 = shalt.err (!%p4678_p3)
}
0x19c6   : > { %s4682_s1 = scalar_lea.hbm %s5818_s29, 128  ;;  %s4686_s0 = scalar_lea.hbm %s5922_s4, 256 }
0x19c7   : > { %p4683_p4 = scmp.ne.s32.totalorder %s5818_s29, %s4682_s1  ;;  %p4687_p9 = scmp.lt.u32.totalorder %s5818_s29, %s5922_s4 }
0x19c8   : > { %p4688_p10 = scmp.lt.u32.totalorder %s4686_s0, %s4682_s1  ;;  %p4690_p12 = scmp.lt.u32.totalorder %s4682_s1, %s5818_s29 }
0x19c9   : > { %p4684_p7 = pnand %p4683_p4, %p4885_p5 }
0x19ca   : > { %p4689_p11 = por %p4688_p10, %p4687_p9 }
0x19cb   : > { %p4685_p8 = pneg %p4684_p7 }
0x19cc   : > { %p4691_p13 = por %p4690_p12, %p4689_p11 }
0x19ce   : > { %p4692_p0 = pnand %p4691_p13, %p4685_p8 }
0x19d0   : > { %4695 = shalt.err (!%p4692_p0)
}
0x19d1   : > { %4353 = dma.vmem_to_hbm [thread:$0]  (%p4885_p5), %s5813_s30, 128, %s5818_s29, %s3486_s26   ;;  %v4256_v8 = vpop.f32.mrb[27].mxu0 }
0x19d2 PF: > { %s5923_s21 = sld [smem:[#allocation7_spill]]  ;;  %s5924_s2 = sld [smem:[#allocation5_spill]] }
0x19d8   : > { %p4359_p1 = scmp.ge.s32.totalorder %s5923_s21, 2  ;;  %s3511_s23 = sand.u32 1, %s5924_s2  }
0x19d9   : > { %s3512_s28 = scalar_lea.sflag [#allocation3], %s3511_s23 }
0x19da   : > { %p4356_p2 = pnand %p4359_p1, %p4889_p6 }
0x19dc   : > { %4713 = dma.done.wait (!%p4356_p2), %s3512_s28, 128  }
0x19dd   : > { %4715 = vsyncadd (!%p4356_p2), %s3512_s28, 4294967168  ;;  %s5926_s24 = sld [smem:[#allocation8_spill]]  ;;  %s5927_s20 = sld [smem:[#allocation6_spill]] }
0x19de   : > { %s5928_s23 = sld [smem:[#allocation9_spill]]  ;;  %s5929_s1 = smov %s4722_s22 }
0x19e3   : > { %p30_p3 = scmp.ge.s32.totalorder %s5926_s24, 4   ;;  %s5930_s22 = smov %s5927_s20 }
0x19e5   :  { %32 = sbr.rel (!%p30_p3) target bundleno = 10 (0xa), region = 143 }
0x19ec   :  { %3517 = vsyncpa [#allocation3], 1 }
0x19ed   :  { %3519 = vsyncpa [#allocation3 + $0x1], 1 }

</bundles_post_ra>
